<compile_context>
chip_gen: v7x
topology: tpu7x:2x2x1
jax: 0.10.0
libtpu: 0.0.40
codegen_flags: <defaults>
</compile_context>

<pallas_src>
import jax
import jax.numpy as jnp
import numpy as np
from jax.experimental import pallas as pl
from jax.experimental.pallas import tpu as pltpu

KSIZE = 5
PAD = 1
EPS = 1e-5


def basic_block5x5_kernel(x_ref, w1_ref, w2_ref, b1_ref, b2_ref, out_ref,
                          xs_ref, hs_ref):
    # x_ref  : (Cin,  NB, L)       unpadded input block, channels-leading
    # w1_ref : (Cout*Cin*5,)       SMEM, conv1 weights with bn1 scale folded in
    # w2_ref : (Cout*Cout*5,)      SMEM, conv2 weights with bn2 scale folded in
    # b1_ref : (Cout,)             SMEM, folded bn1 bias
    # b2_ref : (Cout,)             SMEM, folded bn2 bias
    # out_ref: (Cout, NB, L-4)
    # xs_ref : (Cin,  NB, L+2)     VMEM staging: x with 1-column zero halo
    # hs_ref : (Cout, NB, (L-2)+2) VMEM staging: relu(bn1(conv1(x))) with halo
    cin, nb, L = x_ref.shape
    cout = out_ref.shape[0]
    L1 = L - 2   # conv1 output length
    L2 = L - 4   # conv2 output length

    # Zero only the halo columns (cheap width-1 stores), then stage the input.
    xs_ref[:, :, 0:1] = jnp.zeros((cin, nb, 1), jnp.float32)
    xs_ref[:, :, L + 1:L + 2] = jnp.zeros((cin, nb, 1), jnp.float32)
    hs_ref[:, :, 0:1] = jnp.zeros((cout, nb, 1), jnp.float32)
    hs_ref[:, :, L1 + 1:L1 + 2] = jnp.zeros((cout, nb, 1), jnp.float32)
    xs_ref[:, :, 1:1 + L] = x_ref[...]

    # ---- conv1 (bn1 scale folded into weights) + bias + relu : VPU FMAs ----
    # Load each padded input channel once; build its 5 shifted slabs once and
    # reuse them across all output channels.
    xsl = []
    for ci in range(cin):
        xc = xs_ref[ci]                                   # (NB, L+2)
        xsl.append([xc[:, k:k + L1] for k in range(KSIZE)])
    for co in range(cout):
        acc = jnp.zeros((nb, L1), jnp.float32)
        for ci in range(cin):
            base = (co * cin + ci) * KSIZE
            for k in range(KSIZE):
                acc = acc + w1_ref[base + k] * xsl[ci][k]
        hs_ref[co, :, 1:1 + L1] = jnp.maximum(acc + b1_ref[co], 0.0)

    # ---- conv2 (bn2 scale folded) + bias + cropped residual + relu ----
    hsl = []
    for ci in range(cout):
        hc = hs_ref[ci]                                   # (NB, L1+2)
        hsl.append([hc[:, k:k + L2] for k in range(KSIZE)])
    for co in range(cout):
        acc = jnp.zeros((nb, L2), jnp.float32)
        for ci in range(cout):
            base = (co * cout + ci) * KSIZE
            for k in range(KSIZE):
                acc = acc + w2_ref[base + k] * hsl[ci][k]
        # residual = x[:, :, 0:L-4] : lane-aligned slice of the unpadded input
        out_ref[co] = jnp.maximum(acc + b2_ref[co] + x_ref[co, :, 0:L2], 0.0)


def basic_block5x5(x, w1, w2, gamma1, beta1, mean1, var1,
                   gamma2, beta2, mean2, var2, eps=EPS):
    N, C, L = x.shape
    Cout, Cin, K = w1.shape
    assert K == KSIZE and Cin == C
    assert Cout == C, "downsample=None requires inplanes5 == planes"
    L1, L2 = L - 2, L - 4

    # Batch block: whole batch when small, otherwise sublane-aligned chunks
    # (also gives each TensorCore multiple grid steps once N grows).
    NB = N if N <= 8 else 8
    grid = (pl.cdiv(N, NB),)

    # Layout plumbing (wrapper-side only): channels-leading, batch on
    # sublanes, length on lanes.
    xt = jnp.transpose(x, (1, 0, 2)).astype(jnp.float32)          # (C, N, L)

    # Fold eval-mode BN into conv weights (scale) + per-channel bias.
    s1 = gamma1 / jnp.sqrt(var1 + eps)
    b1 = (beta1 - mean1 * s1).astype(jnp.float32)
    s2 = gamma2 / jnp.sqrt(var2 + eps)
    b2 = (beta2 - mean2 * s2).astype(jnp.float32)
    w1f = (w1 * s1[:, None, None]).astype(jnp.float32).reshape(-1)  # (Cout*Cin*5,)
    w2f = (w2 * s2[:, None, None]).astype(jnp.float32).reshape(-1)  # (Cout*Cout*5,)

    out_t = pl.pallas_call(
        basic_block5x5_kernel,
        out_shape=jax.ShapeDtypeStruct((Cout, N, L2), jnp.float32),
        grid_spec=pltpu.PrefetchScalarGridSpec(
            num_scalar_prefetch=0,
            grid=grid,
            in_specs=[
                pl.BlockSpec((C, NB, L), lambda n: (0, n, 0)),
                pl.BlockSpec(memory_space=pltpu.MemorySpace.SMEM),
                pl.BlockSpec(memory_space=pltpu.MemorySpace.SMEM),
                pl.BlockSpec(memory_space=pltpu.MemorySpace.SMEM),
                pl.BlockSpec(memory_space=pltpu.MemorySpace.SMEM),
            ],
            out_specs=pl.BlockSpec((Cout, NB, L2), lambda n: (0, n, 0)),
            scratch_shapes=[
                pltpu.VMEM((C, NB, L + 2), jnp.float32),
                pltpu.VMEM((Cout, NB, L1 + 2), jnp.float32),
            ],
        ),
        compiler_params=pltpu.CompilerParams(
            dimension_semantics=("parallel",)),
    )(xt, w1f, w2f, b1, b2)

    return jnp.transpose(out_t, (1, 0, 2))                        # (N, Cout, L2)


def reference(x, w1, w2, gamma1, beta1, mean1, var1,
              gamma2, beta2, mean2, var2, eps=EPS):
    conv = lambda inp, w: jax.lax.conv_general_dilated(
        inp, w, window_strides=(1,), padding=[(PAD, PAD)],
        dimension_numbers=('NCH', 'OIH', 'NCH'))
    bn = lambda t, g, b, m, v: ((t - m[None, :, None]) /
                                jnp.sqrt(v + eps)[None, :, None]
                                * g[None, :, None] + b[None, :, None])
    out = jnp.maximum(bn(conv(x, w1), gamma1, beta1, mean1, var1), 0.0)
    out = bn(conv(out, w2), gamma2, beta2, mean2, var2)
    d = x.shape[2] - out.shape[2]
    residual = x[:, :, 0:-d]
    return jnp.maximum(residual + out, 0.0)


if __name__ == "__main__":
    N, C, L = 2, 4, 16   # inplanes5 = planes = 4, stride = 1, downsample = None
    key = jax.random.PRNGKey(0)
    ks = jax.random.split(key, 10)

    bound1 = 1.0 / np.sqrt(C * KSIZE)
    x = jax.random.normal(ks[0], (N, C, L), jnp.float32)
    w1 = jax.random.uniform(ks[1], (C, C, KSIZE), jnp.float32, -bound1, bound1)
    w2 = jax.random.uniform(ks[2], (C, C, KSIZE), jnp.float32, -bound1, bound1)

    gamma1 = jax.random.uniform(ks[3], (C,), jnp.float32, 0.5, 1.5)
    beta1 = 0.1 * jax.random.normal(ks[4], (C,), jnp.float32)
    mean1 = 0.1 * jax.random.normal(ks[5], (C,), jnp.float32)
    var1 = jax.random.uniform(ks[6], (C,), jnp.float32, 0.5, 1.5)
    gamma2 = jax.random.uniform(ks[7], (C,), jnp.float32, 0.5, 1.5)
    beta2 = 0.1 * jax.random.normal(ks[8], (C,), jnp.float32)
    mean2 = 0.1 * jax.random.normal(ks[9], (C,), jnp.float32)
    var2 = jnp.ones((C,), jnp.float32)

    out = basic_block5x5(x, w1, w2, gamma1, beta1, mean1, var1,
                         gamma2, beta2, mean2, var2)
    out = jax.block_until_ready(out)

    ref = reference(x, w1, w2, gamma1, beta1, mean1, var1,
                    gamma2, beta2, mean2, var2)
    assert out.shape == (N, C, L - 4), out.shape
    np.testing.assert_allclose(np.asarray(out), np.asarray(ref),
                               rtol=1e-4, atol=1e-4)
    print("KERNEL_OK")
</pallas_src>

<mosaic_0001>
module attributes {stable_mosaic.version = 11 : i64} {
  func.func @basic_block5x5_kernel(%arg0: i32, %arg1: memref<4x2x16xf32, #tpu.memory_space<vmem>>, %arg2: memref<80xf32, #tpu.memory_space<smem>>, %arg3: memref<80xf32, #tpu.memory_space<smem>>, %arg4: memref<4xf32, #tpu.memory_space<smem>>, %arg5: memref<4xf32, #tpu.memory_space<smem>>, %arg6: memref<4x2x12xf32, #tpu.memory_space<vmem>>, %arg7: memref<4x2x18xf32, #tpu.memory_space<vmem>>, %arg8: memref<4x2x16xf32, #tpu.memory_space<vmem>>) attributes {dimension_semantics = [#tpu.dimension_semantics<parallel>], iteration_bounds = array<i64: 1>, scalar_prefetch = 0 : i64, scratch_operands = 2 : i64, tpu.core_type = #tpu.core_type<tc>, window_params = [{transform_indices = @transform_0, window_bounds = array<i64: 4, 2, 16>}, {transform_indices = @transform_1, window_bounds = array<i64: 80>}, {transform_indices = @transform_2, window_bounds = array<i64: 80>}, {transform_indices = @transform_3, window_bounds = array<i64: 4>}, {transform_indices = @transform_4, window_bounds = array<i64: 4>}, {transform_indices = @transform_5, window_bounds = array<i64: 4, 2, 12>}]} {
    %cst = arith.constant 0.000000e+00 : f32
    %0 = vector.broadcast %cst : f32 to vector<4x2x1xf32>
    %c0 = arith.constant 0 : index
    %c0_0 = arith.constant 0 : index
    %c0_1 = arith.constant 0 : index
    %1 = vector.load %arg7[%c0, %c0_0, %c0_1] : memref<4x2x18xf32, #tpu.memory_space<vmem>>, vector<4x2x1xf32>
    tpu.vector_store %arg7[%c0, %c0_0, %c0_1], %0 {strides = array<i32>} : memref<4x2x18xf32, #tpu.memory_space<vmem>>, vector<4x2x1xf32>,
    %cst_2 = arith.constant 0.000000e+00 : f32
    %2 = vector.broadcast %cst_2 : f32 to vector<4x2x1xf32>
    %c0_3 = arith.constant 0 : index
    %c0_4 = arith.constant 0 : index
    %c17 = arith.constant 17 : index
    %3 = vector.load %arg7[%c0_3, %c0_4, %c17] : memref<4x2x18xf32, #tpu.memory_space<vmem>>, vector<4x2x1xf32>
    tpu.vector_store %arg7[%c0_3, %c0_4, %c17], %2 {strides = array<i32>} : memref<4x2x18xf32, #tpu.memory_space<vmem>>, vector<4x2x1xf32>,
    %cst_5 = arith.constant 0.000000e+00 : f32
    %4 = vector.broadcast %cst_5 : f32 to vector<4x2x1xf32>
    %c0_6 = arith.constant 0 : index
    %c0_7 = arith.constant 0 : index
    %c0_8 = arith.constant 0 : index
    %5 = vector.load %arg8[%c0_6, %c0_7, %c0_8] : memref<4x2x16xf32, #tpu.memory_space<vmem>>, vector<4x2x1xf32>
    tpu.vector_store %arg8[%c0_6, %c0_7, %c0_8], %4 {strides = array<i32>} : memref<4x2x16xf32, #tpu.memory_space<vmem>>, vector<4x2x1xf32>,
    %cst_9 = arith.constant 0.000000e+00 : f32
    %6 = vector.broadcast %cst_9 : f32 to vector<4x2x1xf32>
    %c0_10 = arith.constant 0 : index
    %c0_11 = arith.constant 0 : index
    %c15 = arith.constant 15 : index
    %7 = vector.load %arg8[%c0_10, %c0_11, %c15] : memref<4x2x16xf32, #tpu.memory_space<vmem>>, vector<4x2x1xf32>
    tpu.vector_store %arg8[%c0_10, %c0_11, %c15], %6 {strides = array<i32>} : memref<4x2x16xf32, #tpu.memory_space<vmem>>, vector<4x2x1xf32>,
    %c0_12 = arith.constant 0 : index
    %c0_13 = arith.constant 0 : index
    %c0_14 = arith.constant 0 : index
    %8 = vector.load %arg1[%c0_12, %c0_13, %c0_14] : memref<4x2x16xf32, #tpu.memory_space<vmem>>, vector<4x2x16xf32>
    %c0_15 = arith.constant 0 : index
    %c0_16 = arith.constant 0 : index
    %c1 = arith.constant 1 : index
    %9 = vector.load %arg7[%c0_15, %c0_16, %c1] : memref<4x2x18xf32, #tpu.memory_space<vmem>>, vector<4x2x16xf32>
    tpu.vector_store %arg7[%c0_15, %c0_16, %c1], %8 {strides = array<i32>} : memref<4x2x18xf32, #tpu.memory_space<vmem>>, vector<4x2x16xf32>,
    %c0_17 = arith.constant 0 : index
    %c0_18 = arith.constant 0 : index
    %c0_19 = arith.constant 0 : index
    %10 = vector.load %arg7[%c0_17, %c0_18, %c0_19] : memref<4x2x18xf32, #tpu.memory_space<vmem>>, vector<1x2x18xf32>
    %11 = vector.shape_cast %10 : vector<1x2x18xf32> to vector<2x18xf32>
    %12 = vector.extract_strided_slice %11 {offsets = [0, 0], sizes = [2, 14], strides = [1, 1]} : vector<2x18xf32> to vector<2x14xf32>
    %13 = vector.extract_strided_slice %11 {offsets = [0, 1], sizes = [2, 14], strides = [1, 1]} : vector<2x18xf32> to vector<2x14xf32>
    %14 = vector.extract_strided_slice %11 {offsets = [0, 2], sizes = [2, 14], strides = [1, 1]} : vector<2x18xf32> to vector<2x14xf32>
    %15 = vector.extract_strided_slice %11 {offsets = [0, 3], sizes = [2, 14], strides = [1, 1]} : vector<2x18xf32> to vector<2x14xf32>
    %16 = vector.extract_strided_slice %11 {offsets = [0, 4], sizes = [2, 14], strides = [1, 1]} : vector<2x18xf32> to vector<2x14xf32>
    %c1_20 = arith.constant 1 : index
    %c0_21 = arith.constant 0 : index
    %c0_22 = arith.constant 0 : index
    %17 = vector.load %arg7[%c1_20, %c0_21, %c0_22] : memref<4x2x18xf32, #tpu.memory_space<vmem>>, vector<1x2x18xf32>
    %18 = vector.shape_cast %17 : vector<1x2x18xf32> to vector<2x18xf32>
    %19 = vector.extract_strided_slice %18 {offsets = [0, 0], sizes = [2, 14], strides = [1, 1]} : vector<2x18xf32> to vector<2x14xf32>
    %20 = vector.extract_strided_slice %18 {offsets = [0, 1], sizes = [2, 14], strides = [1, 1]} : vector<2x18xf32> to vector<2x14xf32>
    %21 = vector.extract_strided_slice %18 {offsets = [0, 2], sizes = [2, 14], strides = [1, 1]} : vector<2x18xf32> to vector<2x14xf32>
    %22 = vector.extract_strided_slice %18 {offsets = [0, 3], sizes = [2, 14], strides = [1, 1]} : vector<2x18xf32> to vector<2x14xf32>
    %23 = vector.extract_strided_slice %18 {offsets = [0, 4], sizes = [2, 14], strides = [1, 1]} : vector<2x18xf32> to vector<2x14xf32>
    %c2 = arith.constant 2 : index
    %c0_23 = arith.constant 0 : index
    %c0_24 = arith.constant 0 : index
    %24 = vector.load %arg7[%c2, %c0_23, %c0_24] : memref<4x2x18xf32, #tpu.memory_space<vmem>>, vector<1x2x18xf32>
    %25 = vector.shape_cast %24 : vector<1x2x18xf32> to vector<2x18xf32>
    %26 = vector.extract_strided_slice %25 {offsets = [0, 0], sizes = [2, 14], strides = [1, 1]} : vector<2x18xf32> to vector<2x14xf32>
    %27 = vector.extract_strided_slice %25 {offsets = [0, 1], sizes = [2, 14], strides = [1, 1]} : vector<2x18xf32> to vector<2x14xf32>
    %28 = vector.extract_strided_slice %25 {offsets = [0, 2], sizes = [2, 14], strides = [1, 1]} : vector<2x18xf32> to vector<2x14xf32>
    %29 = vector.extract_strided_slice %25 {offsets = [0, 3], sizes = [2, 14], strides = [1, 1]} : vector<2x18xf32> to vector<2x14xf32>
    %30 = vector.extract_strided_slice %25 {offsets = [0, 4], sizes = [2, 14], strides = [1, 1]} : vector<2x18xf32> to vector<2x14xf32>
    %c3 = arith.constant 3 : index
    %c0_25 = arith.constant 0 : index
    %c0_26 = arith.constant 0 : index
    %31 = vector.load %arg7[%c3, %c0_25, %c0_26] : memref<4x2x18xf32, #tpu.memory_space<vmem>>, vector<1x2x18xf32>
    %32 = vector.shape_cast %31 : vector<1x2x18xf32> to vector<2x18xf32>
    %33 = vector.extract_strided_slice %32 {offsets = [0, 0], sizes = [2, 14], strides = [1, 1]} : vector<2x18xf32> to vector<2x14xf32>
    %34 = vector.extract_strided_slice %32 {offsets = [0, 1], sizes = [2, 14], strides = [1, 1]} : vector<2x18xf32> to vector<2x14xf32>
    %35 = vector.extract_strided_slice %32 {offsets = [0, 2], sizes = [2, 14], strides = [1, 1]} : vector<2x18xf32> to vector<2x14xf32>
    %36 = vector.extract_strided_slice %32 {offsets = [0, 3], sizes = [2, 14], strides = [1, 1]} : vector<2x18xf32> to vector<2x14xf32>
    %37 = vector.extract_strided_slice %32 {offsets = [0, 4], sizes = [2, 14], strides = [1, 1]} : vector<2x18xf32> to vector<2x14xf32>
    %cst_27 = arith.constant 0.000000e+00 : f32
    %38 = vector.broadcast %cst_27 : f32 to vector<2x14xf32>
    %c0_28 = arith.constant 0 : index
    %39 = memref.load %arg2[%c0_28] : memref<80xf32, #tpu.memory_space<smem>>
    %40 = vector.broadcast %39 : f32 to vector<2x14xf32>
    %41 = arith.mulf %40, %12 : vector<2x14xf32>
    %42 = arith.addf %38, %41 : vector<2x14xf32>
    %c1_29 = arith.constant 1 : index
    %43 = memref.load %arg2[%c1_29] : memref<80xf32, #tpu.memory_space<smem>>
    %44 = vector.broadcast %43 : f32 to vector<2x14xf32>
    %45 = arith.mulf %44, %13 : vector<2x14xf32>
    %46 = arith.addf %42, %45 : vector<2x14xf32>
    %c2_30 = arith.constant 2 : index
    %47 = memref.load %arg2[%c2_30] : memref<80xf32, #tpu.memory_space<smem>>
    %48 = vector.broadcast %47 : f32 to vector<2x14xf32>
    %49 = arith.mulf %48, %14 : vector<2x14xf32>
    %50 = arith.addf %46, %49 : vector<2x14xf32>
    %c3_31 = arith.constant 3 : index
    %51 = memref.load %arg2[%c3_31] : memref<80xf32, #tpu.memory_space<smem>>
    %52 = vector.broadcast %51 : f32 to vector<2x14xf32>
    %53 = arith.mulf %52, %15 : vector<2x14xf32>
    %54 = arith.addf %50, %53 : vector<2x14xf32>
    %c4 = arith.constant 4 : index
    %55 = memref.load %arg2[%c4] : memref<80xf32, #tpu.memory_space<smem>>
    %56 = vector.broadcast %55 : f32 to vector<2x14xf32>
    %57 = arith.mulf %56, %16 : vector<2x14xf32>
    %58 = arith.addf %54, %57 : vector<2x14xf32>
    %c5 = arith.constant 5 : index
    %59 = memref.load %arg2[%c5] : memref<80xf32, #tpu.memory_space<smem>>
    %60 = vector.broadcast %59 : f32 to vector<2x14xf32>
    %61 = arith.mulf %60, %19 : vector<2x14xf32>
    %62 = arith.addf %58, %61 : vector<2x14xf32>
    %c6 = arith.constant 6 : index
    %63 = memref.load %arg2[%c6] : memref<80xf32, #tpu.memory_space<smem>>
    %64 = vector.broadcast %63 : f32 to vector<2x14xf32>
    %65 = arith.mulf %64, %20 : vector<2x14xf32>
    %66 = arith.addf %62, %65 : vector<2x14xf32>
    %c7 = arith.constant 7 : index
    %67 = memref.load %arg2[%c7] : memref<80xf32, #tpu.memory_space<smem>>
    %68 = vector.broadcast %67 : f32 to vector<2x14xf32>
    %69 = arith.mulf %68, %21 : vector<2x14xf32>
    %70 = arith.addf %66, %69 : vector<2x14xf32>
    %c8 = arith.constant 8 : index
    %71 = memref.load %arg2[%c8] : memref<80xf32, #tpu.memory_space<smem>>
    %72 = vector.broadcast %71 : f32 to vector<2x14xf32>
    %73 = arith.mulf %72, %22 : vector<2x14xf32>
    %74 = arith.addf %70, %73 : vector<2x14xf32>
    %c9 = arith.constant 9 : index
    %75 = memref.load %arg2[%c9] : memref<80xf32, #tpu.memory_space<smem>>
    %76 = vector.broadcast %75 : f32 to vector<2x14xf32>
    %77 = arith.mulf %76, %23 : vector<2x14xf32>
    %78 = arith.addf %74, %77 : vector<2x14xf32>
    %c10 = arith.constant 10 : index
    %79 = memref.load %arg2[%c10] : memref<80xf32, #tpu.memory_space<smem>>
    %80 = vector.broadcast %79 : f32 to vector<2x14xf32>
    %81 = arith.mulf %80, %26 : vector<2x14xf32>
    %82 = arith.addf %78, %81 : vector<2x14xf32>
    %c11 = arith.constant 11 : index
    %83 = memref.load %arg2[%c11] : memref<80xf32, #tpu.memory_space<smem>>
    %84 = vector.broadcast %83 : f32 to vector<2x14xf32>
    %85 = arith.mulf %84, %27 : vector<2x14xf32>
    %86 = arith.addf %82, %85 : vector<2x14xf32>
    %c12 = arith.constant 12 : index
    %87 = memref.load %arg2[%c12] : memref<80xf32, #tpu.memory_space<smem>>
    %88 = vector.broadcast %87 : f32 to vector<2x14xf32>
    %89 = arith.mulf %88, %28 : vector<2x14xf32>
    %90 = arith.addf %86, %89 : vector<2x14xf32>
    %c13 = arith.constant 13 : index
    %91 = memref.load %arg2[%c13] : memref<80xf32, #tpu.memory_space<smem>>
    %92 = vector.broadcast %91 : f32 to vector<2x14xf32>
    %93 = arith.mulf %92, %29 : vector<2x14xf32>
    %94 = arith.addf %90, %93 : vector<2x14xf32>
    %c14 = arith.constant 14 : index
    %95 = memref.load %arg2[%c14] : memref<80xf32, #tpu.memory_space<smem>>
    %96 = vector.broadcast %95 : f32 to vector<2x14xf32>
    %97 = arith.mulf %96, %30 : vector<2x14xf32>
    %98 = arith.addf %94, %97 : vector<2x14xf32>
    %c15_32 = arith.constant 15 : index
    %99 = memref.load %arg2[%c15_32] : memref<80xf32, #tpu.memory_space<smem>>
    %100 = vector.broadcast %99 : f32 to vector<2x14xf32>
    %101 = arith.mulf %100, %33 : vector<2x14xf32>
    %102 = arith.addf %98, %101 : vector<2x14xf32>
    %c16 = arith.constant 16 : index
    %103 = memref.load %arg2[%c16] : memref<80xf32, #tpu.memory_space<smem>>
    %104 = vector.broadcast %103 : f32 to vector<2x14xf32>
    %105 = arith.mulf %104, %34 : vector<2x14xf32>
    %106 = arith.addf %102, %105 : vector<2x14xf32>
    %c17_33 = arith.constant 17 : index
    %107 = memref.load %arg2[%c17_33] : memref<80xf32, #tpu.memory_space<smem>>
    %108 = vector.broadcast %107 : f32 to vector<2x14xf32>
    %109 = arith.mulf %108, %35 : vector<2x14xf32>
    %110 = arith.addf %106, %109 : vector<2x14xf32>
    %c18 = arith.constant 18 : index
    %111 = memref.load %arg2[%c18] : memref<80xf32, #tpu.memory_space<smem>>
    %112 = vector.broadcast %111 : f32 to vector<2x14xf32>
    %113 = arith.mulf %112, %36 : vector<2x14xf32>
    %114 = arith.addf %110, %113 : vector<2x14xf32>
    %c19 = arith.constant 19 : index
    %115 = memref.load %arg2[%c19] : memref<80xf32, #tpu.memory_space<smem>>
    %116 = vector.broadcast %115 : f32 to vector<2x14xf32>
    %117 = arith.mulf %116, %37 : vector<2x14xf32>
    %118 = arith.addf %114, %117 : vector<2x14xf32>
    %c0_34 = arith.constant 0 : index
    %119 = memref.load %arg4[%c0_34] : memref<4xf32, #tpu.memory_space<smem>>
    %120 = vector.broadcast %119 : f32 to vector<2x14xf32>
    %121 = arith.addf %118, %120 : vector<2x14xf32>
    %cst_35 = arith.constant 0.000000e+00 : f32
    %122 = vector.broadcast %cst_35 : f32 to vector<2x14xf32>
    %123 = arith.maximumf %121, %122 : vector<2x14xf32>
    %c0_36 = arith.constant 0 : index
    %c0_37 = arith.constant 0 : index
    %c1_38 = arith.constant 1 : index
    %124 = vector.load %arg8[%c0_36, %c0_37, %c1_38] : memref<4x2x16xf32, #tpu.memory_space<vmem>>, vector<1x2x14xf32>
    %125 = vector.shape_cast %124 : vector<1x2x14xf32> to vector<2x14xf32>
    %126 = vector.shape_cast %123 : vector<2x14xf32> to vector<1x2x14xf32>
    tpu.vector_store %arg8[%c0_36, %c0_37, %c1_38], %126 {strides = array<i32>} : memref<4x2x16xf32, #tpu.memory_space<vmem>>, vector<1x2x14xf32>,
    %cst_39 = arith.constant 0.000000e+00 : f32
    %127 = vector.broadcast %cst_39 : f32 to vector<2x14xf32>
    %c20 = arith.constant 20 : index
    %128 = memref.load %arg2[%c20] : memref<80xf32, #tpu.memory_space<smem>>
    %129 = vector.broadcast %128 : f32 to vector<2x14xf32>
    %130 = arith.mulf %129, %12 : vector<2x14xf32>
    %131 = arith.addf %127, %130 : vector<2x14xf32>
    %c21 = arith.constant 21 : index
    %132 = memref.load %arg2[%c21] : memref<80xf32, #tpu.memory_space<smem>>
    %133 = vector.broadcast %132 : f32 to vector<2x14xf32>
    %134 = arith.mulf %133, %13 : vector<2x14xf32>
    %135 = arith.addf %131, %134 : vector<2x14xf32>
    %c22 = arith.constant 22 : index
    %136 = memref.load %arg2[%c22] : memref<80xf32, #tpu.memory_space<smem>>
    %137 = vector.broadcast %136 : f32 to vector<2x14xf32>
    %138 = arith.mulf %137, %14 : vector<2x14xf32>
    %139 = arith.addf %135, %138 : vector<2x14xf32>
    %c23 = arith.constant 23 : index
    %140 = memref.load %arg2[%c23] : memref<80xf32, #tpu.memory_space<smem>>
    %141 = vector.broadcast %140 : f32 to vector<2x14xf32>
    %142 = arith.mulf %141, %15 : vector<2x14xf32>
    %143 = arith.addf %139, %142 : vector<2x14xf32>
    %c24 = arith.constant 24 : index
    %144 = memref.load %arg2[%c24] : memref<80xf32, #tpu.memory_space<smem>>
    %145 = vector.broadcast %144 : f32 to vector<2x14xf32>
    %146 = arith.mulf %145, %16 : vector<2x14xf32>
    %147 = arith.addf %143, %146 : vector<2x14xf32>
    %c25 = arith.constant 25 : index
    %148 = memref.load %arg2[%c25] : memref<80xf32, #tpu.memory_space<smem>>
    %149 = vector.broadcast %148 : f32 to vector<2x14xf32>
    %150 = arith.mulf %149, %19 : vector<2x14xf32>
    %151 = arith.addf %147, %150 : vector<2x14xf32>
    %c26 = arith.constant 26 : index
    %152 = memref.load %arg2[%c26] : memref<80xf32, #tpu.memory_space<smem>>
    %153 = vector.broadcast %152 : f32 to vector<2x14xf32>
    %154 = arith.mulf %153, %20 : vector<2x14xf32>
    %155 = arith.addf %151, %154 : vector<2x14xf32>
    %c27 = arith.constant 27 : index
    %156 = memref.load %arg2[%c27] : memref<80xf32, #tpu.memory_space<smem>>
    %157 = vector.broadcast %156 : f32 to vector<2x14xf32>
    %158 = arith.mulf %157, %21 : vector<2x14xf32>
    %159 = arith.addf %155, %158 : vector<2x14xf32>
    %c28 = arith.constant 28 : index
    %160 = memref.load %arg2[%c28] : memref<80xf32, #tpu.memory_space<smem>>
    %161 = vector.broadcast %160 : f32 to vector<2x14xf32>
    %162 = arith.mulf %161, %22 : vector<2x14xf32>
    %163 = arith.addf %159, %162 : vector<2x14xf32>
    %c29 = arith.constant 29 : index
    %164 = memref.load %arg2[%c29] : memref<80xf32, #tpu.memory_space<smem>>
    %165 = vector.broadcast %164 : f32 to vector<2x14xf32>
    %166 = arith.mulf %165, %23 : vector<2x14xf32>
    %167 = arith.addf %163, %166 : vector<2x14xf32>
    %c30 = arith.constant 30 : index
    %168 = memref.load %arg2[%c30] : memref<80xf32, #tpu.memory_space<smem>>
    %169 = vector.broadcast %168 : f32 to vector<2x14xf32>
    %170 = arith.mulf %169, %26 : vector<2x14xf32>
    %171 = arith.addf %167, %170 : vector<2x14xf32>
    %c31 = arith.constant 31 : index
    %172 = memref.load %arg2[%c31] : memref<80xf32, #tpu.memory_space<smem>>
    %173 = vector.broadcast %172 : f32 to vector<2x14xf32>
    %174 = arith.mulf %173, %27 : vector<2x14xf32>
    %175 = arith.addf %171, %174 : vector<2x14xf32>
    %c32 = arith.constant 32 : index
    %176 = memref.load %arg2[%c32] : memref<80xf32, #tpu.memory_space<smem>>
    %177 = vector.broadcast %176 : f32 to vector<2x14xf32>
    %178 = arith.mulf %177, %28 : vector<2x14xf32>
    %179 = arith.addf %175, %178 : vector<2x14xf32>
    %c33 = arith.constant 33 : index
    %180 = memref.load %arg2[%c33] : memref<80xf32, #tpu.memory_space<smem>>
    %181 = vector.broadcast %180 : f32 to vector<2x14xf32>
    %182 = arith.mulf %181, %29 : vector<2x14xf32>
    %183 = arith.addf %179, %182 : vector<2x14xf32>
    %c34 = arith.constant 34 : index
    %184 = memref.load %arg2[%c34] : memref<80xf32, #tpu.memory_space<smem>>
    %185 = vector.broadcast %184 : f32 to vector<2x14xf32>
    %186 = arith.mulf %185, %30 : vector<2x14xf32>
    %187 = arith.addf %183, %186 : vector<2x14xf32>
    %c35 = arith.constant 35 : index
    %188 = memref.load %arg2[%c35] : memref<80xf32, #tpu.memory_space<smem>>
    %189 = vector.broadcast %188 : f32 to vector<2x14xf32>
    %190 = arith.mulf %189, %33 : vector<2x14xf32>
    %191 = arith.addf %187, %190 : vector<2x14xf32>
    %c36 = arith.constant 36 : index
    %192 = memref.load %arg2[%c36] : memref<80xf32, #tpu.memory_space<smem>>
    %193 = vector.broadcast %192 : f32 to vector<2x14xf32>
    %194 = arith.mulf %193, %34 : vector<2x14xf32>
    %195 = arith.addf %191, %194 : vector<2x14xf32>
    %c37 = arith.constant 37 : index
    %196 = memref.load %arg2[%c37] : memref<80xf32, #tpu.memory_space<smem>>
    %197 = vector.broadcast %196 : f32 to vector<2x14xf32>
    %198 = arith.mulf %197, %35 : vector<2x14xf32>
    %199 = arith.addf %195, %198 : vector<2x14xf32>
    %c38 = arith.constant 38 : index
    %200 = memref.load %arg2[%c38] : memref<80xf32, #tpu.memory_space<smem>>
    %201 = vector.broadcast %200 : f32 to vector<2x14xf32>
    %202 = arith.mulf %201, %36 : vector<2x14xf32>
    %203 = arith.addf %199, %202 : vector<2x14xf32>
    %c39 = arith.constant 39 : index
    %204 = memref.load %arg2[%c39] : memref<80xf32, #tpu.memory_space<smem>>
    %205 = vector.broadcast %204 : f32 to vector<2x14xf32>
    %206 = arith.mulf %205, %37 : vector<2x14xf32>
    %207 = arith.addf %203, %206 : vector<2x14xf32>
    %c1_40 = arith.constant 1 : index
    %208 = memref.load %arg4[%c1_40] : memref<4xf32, #tpu.memory_space<smem>>
    %209 = vector.broadcast %208 : f32 to vector<2x14xf32>
    %210 = arith.addf %207, %209 : vector<2x14xf32>
    %cst_41 = arith.constant 0.000000e+00 : f32
    %211 = vector.broadcast %cst_41 : f32 to vector<2x14xf32>
    %212 = arith.maximumf %210, %211 : vector<2x14xf32>
    %c1_42 = arith.constant 1 : index
    %c0_43 = arith.constant 0 : index
    %c1_44 = arith.constant 1 : index
    %213 = vector.load %arg8[%c1_42, %c0_43, %c1_44] : memref<4x2x16xf32, #tpu.memory_space<vmem>>, vector<1x2x14xf32>
    %214 = vector.shape_cast %213 : vector<1x2x14xf32> to vector<2x14xf32>
    %215 = vector.shape_cast %212 : vector<2x14xf32> to vector<1x2x14xf32>
    tpu.vector_store %arg8[%c1_42, %c0_43, %c1_44], %215 {strides = array<i32>} : memref<4x2x16xf32, #tpu.memory_space<vmem>>, vector<1x2x14xf32>,
    %cst_45 = arith.constant 0.000000e+00 : f32
    %216 = vector.broadcast %cst_45 : f32 to vector<2x14xf32>
    %c40 = arith.constant 40 : index
    %217 = memref.load %arg2[%c40] : memref<80xf32, #tpu.memory_space<smem>>
    %218 = vector.broadcast %217 : f32 to vector<2x14xf32>
    %219 = arith.mulf %218, %12 : vector<2x14xf32>
    %220 = arith.addf %216, %219 : vector<2x14xf32>
    %c41 = arith.constant 41 : index
    %221 = memref.load %arg2[%c41] : memref<80xf32, #tpu.memory_space<smem>>
    %222 = vector.broadcast %221 : f32 to vector<2x14xf32>
    %223 = arith.mulf %222, %13 : vector<2x14xf32>
    %224 = arith.addf %220, %223 : vector<2x14xf32>
    %c42 = arith.constant 42 : index
    %225 = memref.load %arg2[%c42] : memref<80xf32, #tpu.memory_space<smem>>
    %226 = vector.broadcast %225 : f32 to vector<2x14xf32>
    %227 = arith.mulf %226, %14 : vector<2x14xf32>
    %228 = arith.addf %224, %227 : vector<2x14xf32>
    %c43 = arith.constant 43 : index
    %229 = memref.load %arg2[%c43] : memref<80xf32, #tpu.memory_space<smem>>
    %230 = vector.broadcast %229 : f32 to vector<2x14xf32>
    %231 = arith.mulf %230, %15 : vector<2x14xf32>
    %232 = arith.addf %228, %231 : vector<2x14xf32>
    %c44 = arith.constant 44 : index
    %233 = memref.load %arg2[%c44] : memref<80xf32, #tpu.memory_space<smem>>
    %234 = vector.broadcast %233 : f32 to vector<2x14xf32>
    %235 = arith.mulf %234, %16 : vector<2x14xf32>
    %236 = arith.addf %232, %235 : vector<2x14xf32>
    %c45 = arith.constant 45 : index
    %237 = memref.load %arg2[%c45] : memref<80xf32, #tpu.memory_space<smem>>
    %238 = vector.broadcast %237 : f32 to vector<2x14xf32>
    %239 = arith.mulf %238, %19 : vector<2x14xf32>
    %240 = arith.addf %236, %239 : vector<2x14xf32>
    %c46 = arith.constant 46 : index
    %241 = memref.load %arg2[%c46] : memref<80xf32, #tpu.memory_space<smem>>
    %242 = vector.broadcast %241 : f32 to vector<2x14xf32>
    %243 = arith.mulf %242, %20 : vector<2x14xf32>
    %244 = arith.addf %240, %243 : vector<2x14xf32>
    %c47 = arith.constant 47 : index
    %245 = memref.load %arg2[%c47] : memref<80xf32, #tpu.memory_space<smem>>
    %246 = vector.broadcast %245 : f32 to vector<2x14xf32>
    %247 = arith.mulf %246, %21 : vector<2x14xf32>
    %248 = arith.addf %244, %247 : vector<2x14xf32>
    %c48 = arith.constant 48 : index
    %249 = memref.load %arg2[%c48] : memref<80xf32, #tpu.memory_space<smem>>
    %250 = vector.broadcast %249 : f32 to vector<2x14xf32>
    %251 = arith.mulf %250, %22 : vector<2x14xf32>
    %252 = arith.addf %248, %251 : vector<2x14xf32>
    %c49 = arith.constant 49 : index
    %253 = memref.load %arg2[%c49] : memref<80xf32, #tpu.memory_space<smem>>
    %254 = vector.broadcast %253 : f32 to vector<2x14xf32>
    %255 = arith.mulf %254, %23 : vector<2x14xf32>
    %256 = arith.addf %252, %255 : vector<2x14xf32>
    %c50 = arith.constant 50 : index
    %257 = memref.load %arg2[%c50] : memref<80xf32, #tpu.memory_space<smem>>
    %258 = vector.broadcast %257 : f32 to vector<2x14xf32>
    %259 = arith.mulf %258, %26 : vector<2x14xf32>
    %260 = arith.addf %256, %259 : vector<2x14xf32>
    %c51 = arith.constant 51 : index
    %261 = memref.load %arg2[%c51] : memref<80xf32, #tpu.memory_space<smem>>
    %262 = vector.broadcast %261 : f32 to vector<2x14xf32>
    %263 = arith.mulf %262, %27 : vector<2x14xf32>
    %264 = arith.addf %260, %263 : vector<2x14xf32>
    %c52 = arith.constant 52 : index
    %265 = memref.load %arg2[%c52] : memref<80xf32, #tpu.memory_space<smem>>
    %266 = vector.broadcast %265 : f32 to vector<2x14xf32>
    %267 = arith.mulf %266, %28 : vector<2x14xf32>
    %268 = arith.addf %264, %267 : vector<2x14xf32>
    %c53 = arith.constant 53 : index
    %269 = memref.load %arg2[%c53] : memref<80xf32, #tpu.memory_space<smem>>
    %270 = vector.broadcast %269 : f32 to vector<2x14xf32>
    %271 = arith.mulf %270, %29 : vector<2x14xf32>
    %272 = arith.addf %268, %271 : vector<2x14xf32>
    %c54 = arith.constant 54 : index
    %273 = memref.load %arg2[%c54] : memref<80xf32, #tpu.memory_space<smem>>
    %274 = vector.broadcast %273 : f32 to vector<2x14xf32>
    %275 = arith.mulf %274, %30 : vector<2x14xf32>
    %276 = arith.addf %272, %275 : vector<2x14xf32>
    %c55 = arith.constant 55 : index
    %277 = memref.load %arg2[%c55] : memref<80xf32, #tpu.memory_space<smem>>
    %278 = vector.broadcast %277 : f32 to vector<2x14xf32>
    %279 = arith.mulf %278, %33 : vector<2x14xf32>
    %280 = arith.addf %276, %279 : vector<2x14xf32>
    %c56 = arith.constant 56 : index
    %281 = memref.load %arg2[%c56] : memref<80xf32, #tpu.memory_space<smem>>
    %282 = vector.broadcast %281 : f32 to vector<2x14xf32>
    %283 = arith.mulf %282, %34 : vector<2x14xf32>
    %284 = arith.addf %280, %283 : vector<2x14xf32>
    %c57 = arith.constant 57 : index
    %285 = memref.load %arg2[%c57] : memref<80xf32, #tpu.memory_space<smem>>
    %286 = vector.broadcast %285 : f32 to vector<2x14xf32>
    %287 = arith.mulf %286, %35 : vector<2x14xf32>
    %288 = arith.addf %284, %287 : vector<2x14xf32>
    %c58 = arith.constant 58 : index
    %289 = memref.load %arg2[%c58] : memref<80xf32, #tpu.memory_space<smem>>
    %290 = vector.broadcast %289 : f32 to vector<2x14xf32>
    %291 = arith.mulf %290, %36 : vector<2x14xf32>
    %292 = arith.addf %288, %291 : vector<2x14xf32>
    %c59 = arith.constant 59 : index
    %293 = memref.load %arg2[%c59] : memref<80xf32, #tpu.memory_space<smem>>
    %294 = vector.broadcast %293 : f32 to vector<2x14xf32>
    %295 = arith.mulf %294, %37 : vector<2x14xf32>
    %296 = arith.addf %292, %295 : vector<2x14xf32>
    %c2_46 = arith.constant 2 : index
    %297 = memref.load %arg4[%c2_46] : memref<4xf32, #tpu.memory_space<smem>>
    %298 = vector.broadcast %297 : f32 to vector<2x14xf32>
    %299 = arith.addf %296, %298 : vector<2x14xf32>
    %cst_47 = arith.constant 0.000000e+00 : f32
    %300 = vector.broadcast %cst_47 : f32 to vector<2x14xf32>
    %301 = arith.maximumf %299, %300 : vector<2x14xf32>
    %c2_48 = arith.constant 2 : index
    %c0_49 = arith.constant 0 : index
    %c1_50 = arith.constant 1 : index
    %302 = vector.load %arg8[%c2_48, %c0_49, %c1_50] : memref<4x2x16xf32, #tpu.memory_space<vmem>>, vector<1x2x14xf32>
    %303 = vector.shape_cast %302 : vector<1x2x14xf32> to vector<2x14xf32>
    %304 = vector.shape_cast %301 : vector<2x14xf32> to vector<1x2x14xf32>
    tpu.vector_store %arg8[%c2_48, %c0_49, %c1_50], %304 {strides = array<i32>} : memref<4x2x16xf32, #tpu.memory_space<vmem>>, vector<1x2x14xf32>,
    %cst_51 = arith.constant 0.000000e+00 : f32
    %305 = vector.broadcast %cst_51 : f32 to vector<2x14xf32>
    %c60 = arith.constant 60 : index
    %306 = memref.load %arg2[%c60] : memref<80xf32, #tpu.memory_space<smem>>
    %307 = vector.broadcast %306 : f32 to vector<2x14xf32>
    %308 = arith.mulf %307, %12 : vector<2x14xf32>
    %309 = arith.addf %305, %308 : vector<2x14xf32>
    %c61 = arith.constant 61 : index
    %310 = memref.load %arg2[%c61] : memref<80xf32, #tpu.memory_space<smem>>
    %311 = vector.broadcast %310 : f32 to vector<2x14xf32>
    %312 = arith.mulf %311, %13 : vector<2x14xf32>
    %313 = arith.addf %309, %312 : vector<2x14xf32>
    %c62 = arith.constant 62 : index
    %314 = memref.load %arg2[%c62] : memref<80xf32, #tpu.memory_space<smem>>
    %315 = vector.broadcast %314 : f32 to vector<2x14xf32>
    %316 = arith.mulf %315, %14 : vector<2x14xf32>
    %317 = arith.addf %313, %316 : vector<2x14xf32>
    %c63 = arith.constant 63 : index
    %318 = memref.load %arg2[%c63] : memref<80xf32, #tpu.memory_space<smem>>
    %319 = vector.broadcast %318 : f32 to vector<2x14xf32>
    %320 = arith.mulf %319, %15 : vector<2x14xf32>
    %321 = arith.addf %317, %320 : vector<2x14xf32>
    %c64 = arith.constant 64 : index
    %322 = memref.load %arg2[%c64] : memref<80xf32, #tpu.memory_space<smem>>
    %323 = vector.broadcast %322 : f32 to vector<2x14xf32>
    %324 = arith.mulf %323, %16 : vector<2x14xf32>
    %325 = arith.addf %321, %324 : vector<2x14xf32>
    %c65 = arith.constant 65 : index
    %326 = memref.load %arg2[%c65] : memref<80xf32, #tpu.memory_space<smem>>
    %327 = vector.broadcast %326 : f32 to vector<2x14xf32>
    %328 = arith.mulf %327, %19 : vector<2x14xf32>
    %329 = arith.addf %325, %328 : vector<2x14xf32>
    %c66 = arith.constant 66 : index
    %330 = memref.load %arg2[%c66] : memref<80xf32, #tpu.memory_space<smem>>
    %331 = vector.broadcast %330 : f32 to vector<2x14xf32>
    %332 = arith.mulf %331, %20 : vector<2x14xf32>
    %333 = arith.addf %329, %332 : vector<2x14xf32>
    %c67 = arith.constant 67 : index
    %334 = memref.load %arg2[%c67] : memref<80xf32, #tpu.memory_space<smem>>
    %335 = vector.broadcast %334 : f32 to vector<2x14xf32>
    %336 = arith.mulf %335, %21 : vector<2x14xf32>
    %337 = arith.addf %333, %336 : vector<2x14xf32>
    %c68 = arith.constant 68 : index
    %338 = memref.load %arg2[%c68] : memref<80xf32, #tpu.memory_space<smem>>
    %339 = vector.broadcast %338 : f32 to vector<2x14xf32>
    %340 = arith.mulf %339, %22 : vector<2x14xf32>
    %341 = arith.addf %337, %340 : vector<2x14xf32>
    %c69 = arith.constant 69 : index
    %342 = memref.load %arg2[%c69] : memref<80xf32, #tpu.memory_space<smem>>
    %343 = vector.broadcast %342 : f32 to vector<2x14xf32>
    %344 = arith.mulf %343, %23 : vector<2x14xf32>
    %345 = arith.addf %341, %344 : vector<2x14xf32>
    %c70 = arith.constant 70 : index
    %346 = memref.load %arg2[%c70] : memref<80xf32, #tpu.memory_space<smem>>
    %347 = vector.broadcast %346 : f32 to vector<2x14xf32>
    %348 = arith.mulf %347, %26 : vector<2x14xf32>
    %349 = arith.addf %345, %348 : vector<2x14xf32>
    %c71 = arith.constant 71 : index
    %350 = memref.load %arg2[%c71] : memref<80xf32, #tpu.memory_space<smem>>
    %351 = vector.broadcast %350 : f32 to vector<2x14xf32>
    %352 = arith.mulf %351, %27 : vector<2x14xf32>
    %353 = arith.addf %349, %352 : vector<2x14xf32>
    %c72 = arith.constant 72 : index
    %354 = memref.load %arg2[%c72] : memref<80xf32, #tpu.memory_space<smem>>
    %355 = vector.broadcast %354 : f32 to vector<2x14xf32>
    %356 = arith.mulf %355, %28 : vector<2x14xf32>
    %357 = arith.addf %353, %356 : vector<2x14xf32>
    %c73 = arith.constant 73 : index
    %358 = memref.load %arg2[%c73] : memref<80xf32, #tpu.memory_space<smem>>
    %359 = vector.broadcast %358 : f32 to vector<2x14xf32>
    %360 = arith.mulf %359, %29 : vector<2x14xf32>
    %361 = arith.addf %357, %360 : vector<2x14xf32>
    %c74 = arith.constant 74 : index
    %362 = memref.load %arg2[%c74] : memref<80xf32, #tpu.memory_space<smem>>
    %363 = vector.broadcast %362 : f32 to vector<2x14xf32>
    %364 = arith.mulf %363, %30 : vector<2x14xf32>
    %365 = arith.addf %361, %364 : vector<2x14xf32>
    %c75 = arith.constant 75 : index
    %366 = memref.load %arg2[%c75] : memref<80xf32, #tpu.memory_space<smem>>
    %367 = vector.broadcast %366 : f32 to vector<2x14xf32>
    %368 = arith.mulf %367, %33 : vector<2x14xf32>
    %369 = arith.addf %365, %368 : vector<2x14xf32>
    %c76 = arith.constant 76 : index
    %370 = memref.load %arg2[%c76] : memref<80xf32, #tpu.memory_space<smem>>
    %371 = vector.broadcast %370 : f32 to vector<2x14xf32>
    %372 = arith.mulf %371, %34 : vector<2x14xf32>
    %373 = arith.addf %369, %372 : vector<2x14xf32>
    %c77 = arith.constant 77 : index
    %374 = memref.load %arg2[%c77] : memref<80xf32, #tpu.memory_space<smem>>
    %375 = vector.broadcast %374 : f32 to vector<2x14xf32>
    %376 = arith.mulf %375, %35 : vector<2x14xf32>
    %377 = arith.addf %373, %376 : vector<2x14xf32>
    %c78 = arith.constant 78 : index
    %378 = memref.load %arg2[%c78] : memref<80xf32, #tpu.memory_space<smem>>
    %379 = vector.broadcast %378 : f32 to vector<2x14xf32>
    %380 = arith.mulf %379, %36 : vector<2x14xf32>
    %381 = arith.addf %377, %380 : vector<2x14xf32>
    %c79 = arith.constant 79 : index
    %382 = memref.load %arg2[%c79] : memref<80xf32, #tpu.memory_space<smem>>
    %383 = vector.broadcast %382 : f32 to vector<2x14xf32>
    %384 = arith.mulf %383, %37 : vector<2x14xf32>
    %385 = arith.addf %381, %384 : vector<2x14xf32>
    %c3_52 = arith.constant 3 : index
    %386 = memref.load %arg4[%c3_52] : memref<4xf32, #tpu.memory_space<smem>>
    %387 = vector.broadcast %386 : f32 to vector<2x14xf32>
    %388 = arith.addf %385, %387 : vector<2x14xf32>
    %cst_53 = arith.constant 0.000000e+00 : f32
    %389 = vector.broadcast %cst_53 : f32 to vector<2x14xf32>
    %390 = arith.maximumf %388, %389 : vector<2x14xf32>
    %c3_54 = arith.constant 3 : index
    %c0_55 = arith.constant 0 : index
    %c1_56 = arith.constant 1 : index
    %391 = vector.load %arg8[%c3_54, %c0_55, %c1_56] : memref<4x2x16xf32, #tpu.memory_space<vmem>>, vector<1x2x14xf32>
    %392 = vector.shape_cast %391 : vector<1x2x14xf32> to vector<2x14xf32>
    %393 = vector.shape_cast %390 : vector<2x14xf32> to vector<1x2x14xf32>
    tpu.vector_store %arg8[%c3_54, %c0_55, %c1_56], %393 {strides = array<i32>} : memref<4x2x16xf32, #tpu.memory_space<vmem>>, vector<1x2x14xf32>,
    %c0_57 = arith.constant 0 : index
    %c0_58 = arith.constant 0 : index
    %c0_59 = arith.constant 0 : index
    %394 = vector.load %arg8[%c0_57, %c0_58, %c0_59] : memref<4x2x16xf32, #tpu.memory_space<vmem>>, vector<1x2x16xf32>
    %395 = vector.shape_cast %394 : vector<1x2x16xf32> to vector<2x16xf32>
    %396 = vector.extract_strided_slice %395 {offsets = [0, 0], sizes = [2, 12], strides = [1, 1]} : vector<2x16xf32> to vector<2x12xf32>
    %397 = vector.extract_strided_slice %395 {offsets = [0, 1], sizes = [2, 12], strides = [1, 1]} : vector<2x16xf32> to vector<2x12xf32>
    %398 = vector.extract_strided_slice %395 {offsets = [0, 2], sizes = [2, 12], strides = [1, 1]} : vector<2x16xf32> to vector<2x12xf32>
    %399 = vector.extract_strided_slice %395 {offsets = [0, 3], sizes = [2, 12], strides = [1, 1]} : vector<2x16xf32> to vector<2x12xf32>
    %400 = vector.extract_strided_slice %395 {offsets = [0, 4], sizes = [2, 12], strides = [1, 1]} : vector<2x16xf32> to vector<2x12xf32>
    %c1_60 = arith.constant 1 : index
    %c0_61 = arith.constant 0 : index
    %c0_62 = arith.constant 0 : index
    %401 = vector.load %arg8[%c1_60, %c0_61, %c0_62] : memref<4x2x16xf32, #tpu.memory_space<vmem>>, vector<1x2x16xf32>
    %402 = vector.shape_cast %401 : vector<1x2x16xf32> to vector<2x16xf32>
    %403 = vector.extract_strided_slice %402 {offsets = [0, 0], sizes = [2, 12], strides = [1, 1]} : vector<2x16xf32> to vector<2x12xf32>
    %404 = vector.extract_strided_slice %402 {offsets = [0, 1], sizes = [2, 12], strides = [1, 1]} : vector<2x16xf32> to vector<2x12xf32>
    %405 = vector.extract_strided_slice %402 {offsets = [0, 2], sizes = [2, 12], strides = [1, 1]} : vector<2x16xf32> to vector<2x12xf32>
    %406 = vector.extract_strided_slice %402 {offsets = [0, 3], sizes = [2, 12], strides = [1, 1]} : vector<2x16xf32> to vector<2x12xf32>
    %407 = vector.extract_strided_slice %402 {offsets = [0, 4], sizes = [2, 12], strides = [1, 1]} : vector<2x16xf32> to vector<2x12xf32>
    %c2_63 = arith.constant 2 : index
    %c0_64 = arith.constant 0 : index
    %c0_65 = arith.constant 0 : index
    %408 = vector.load %arg8[%c2_63, %c0_64, %c0_65] : memref<4x2x16xf32, #tpu.memory_space<vmem>>, vector<1x2x16xf32>
    %409 = vector.shape_cast %408 : vector<1x2x16xf32> to vector<2x16xf32>
    %410 = vector.extract_strided_slice %409 {offsets = [0, 0], sizes = [2, 12], strides = [1, 1]} : vector<2x16xf32> to vector<2x12xf32>
    %411 = vector.extract_strided_slice %409 {offsets = [0, 1], sizes = [2, 12], strides = [1, 1]} : vector<2x16xf32> to vector<2x12xf32>
    %412 = vector.extract_strided_slice %409 {offsets = [0, 2], sizes = [2, 12], strides = [1, 1]} : vector<2x16xf32> to vector<2x12xf32>
    %413 = vector.extract_strided_slice %409 {offsets = [0, 3], sizes = [2, 12], strides = [1, 1]} : vector<2x16xf32> to vector<2x12xf32>
    %414 = vector.extract_strided_slice %409 {offsets = [0, 4], sizes = [2, 12], strides = [1, 1]} : vector<2x16xf32> to vector<2x12xf32>
    %c3_66 = arith.constant 3 : index
    %c0_67 = arith.constant 0 : index
    %c0_68 = arith.constant 0 : index
    %415 = vector.load %arg8[%c3_66, %c0_67, %c0_68] : memref<4x2x16xf32, #tpu.memory_space<vmem>>, vector<1x2x16xf32>
    %416 = vector.shape_cast %415 : vector<1x2x16xf32> to vector<2x16xf32>
    %417 = vector.extract_strided_slice %416 {offsets = [0, 0], sizes = [2, 12], strides = [1, 1]} : vector<2x16xf32> to vector<2x12xf32>
    %418 = vector.extract_strided_slice %416 {offsets = [0, 1], sizes = [2, 12], strides = [1, 1]} : vector<2x16xf32> to vector<2x12xf32>
    %419 = vector.extract_strided_slice %416 {offsets = [0, 2], sizes = [2, 12], strides = [1, 1]} : vector<2x16xf32> to vector<2x12xf32>
    %420 = vector.extract_strided_slice %416 {offsets = [0, 3], sizes = [2, 12], strides = [1, 1]} : vector<2x16xf32> to vector<2x12xf32>
    %421 = vector.extract_strided_slice %416 {offsets = [0, 4], sizes = [2, 12], strides = [1, 1]} : vector<2x16xf32> to vector<2x12xf32>
    %cst_69 = arith.constant 0.000000e+00 : f32
    %422 = vector.broadcast %cst_69 : f32 to vector<2x12xf32>
    %c0_70 = arith.constant 0 : index
    %423 = memref.load %arg3[%c0_70] : memref<80xf32, #tpu.memory_space<smem>>
    %424 = vector.broadcast %423 : f32 to vector<2x12xf32>
    %425 = arith.mulf %424, %396 : vector<2x12xf32>
    %426 = arith.addf %422, %425 : vector<2x12xf32>
    %c1_71 = arith.constant 1 : index
    %427 = memref.load %arg3[%c1_71] : memref<80xf32, #tpu.memory_space<smem>>
    %428 = vector.broadcast %427 : f32 to vector<2x12xf32>
    %429 = arith.mulf %428, %397 : vector<2x12xf32>
    %430 = arith.addf %426, %429 : vector<2x12xf32>
    %c2_72 = arith.constant 2 : index
    %431 = memref.load %arg3[%c2_72] : memref<80xf32, #tpu.memory_space<smem>>
    %432 = vector.broadcast %431 : f32 to vector<2x12xf32>
    %433 = arith.mulf %432, %398 : vector<2x12xf32>
    %434 = arith.addf %430, %433 : vector<2x12xf32>
    %c3_73 = arith.constant 3 : index
    %435 = memref.load %arg3[%c3_73] : memref<80xf32, #tpu.memory_space<smem>>
    %436 = vector.broadcast %435 : f32 to vector<2x12xf32>
    %437 = arith.mulf %436, %399 : vector<2x12xf32>
    %438 = arith.addf %434, %437 : vector<2x12xf32>
    %c4_74 = arith.constant 4 : index
    %439 = memref.load %arg3[%c4_74] : memref<80xf32, #tpu.memory_space<smem>>
    %440 = vector.broadcast %439 : f32 to vector<2x12xf32>
    %441 = arith.mulf %440, %400 : vector<2x12xf32>
    %442 = arith.addf %438, %441 : vector<2x12xf32>
    %c5_75 = arith.constant 5 : index
    %443 = memref.load %arg3[%c5_75] : memref<80xf32, #tpu.memory_space<smem>>
    %444 = vector.broadcast %443 : f32 to vector<2x12xf32>
    %445 = arith.mulf %444, %403 : vector<2x12xf32>
    %446 = arith.addf %442, %445 : vector<2x12xf32>
    %c6_76 = arith.constant 6 : index
    %447 = memref.load %arg3[%c6_76] : memref<80xf32, #tpu.memory_space<smem>>
    %448 = vector.broadcast %447 : f32 to vector<2x12xf32>
    %449 = arith.mulf %448, %404 : vector<2x12xf32>
    %450 = arith.addf %446, %449 : vector<2x12xf32>
    %c7_77 = arith.constant 7 : index
    %451 = memref.load %arg3[%c7_77] : memref<80xf32, #tpu.memory_space<smem>>
    %452 = vector.broadcast %451 : f32 to vector<2x12xf32>
    %453 = arith.mulf %452, %405 : vector<2x12xf32>
    %454 = arith.addf %450, %453 : vector<2x12xf32>
    %c8_78 = arith.constant 8 : index
    %455 = memref.load %arg3[%c8_78] : memref<80xf32, #tpu.memory_space<smem>>
    %456 = vector.broadcast %455 : f32 to vector<2x12xf32>
    %457 = arith.mulf %456, %406 : vector<2x12xf32>
    %458 = arith.addf %454, %457 : vector<2x12xf32>
    %c9_79 = arith.constant 9 : index
    %459 = memref.load %arg3[%c9_79] : memref<80xf32, #tpu.memory_space<smem>>
    %460 = vector.broadcast %459 : f32 to vector<2x12xf32>
    %461 = arith.mulf %460, %407 : vector<2x12xf32>
    %462 = arith.addf %458, %461 : vector<2x12xf32>
    %c10_80 = arith.constant 10 : index
    %463 = memref.load %arg3[%c10_80] : memref<80xf32, #tpu.memory_space<smem>>
    %464 = vector.broadcast %463 : f32 to vector<2x12xf32>
    %465 = arith.mulf %464, %410 : vector<2x12xf32>
    %466 = arith.addf %462, %465 : vector<2x12xf32>
    %c11_81 = arith.constant 11 : index
    %467 = memref.load %arg3[%c11_81] : memref<80xf32, #tpu.memory_space<smem>>
    %468 = vector.broadcast %467 : f32 to vector<2x12xf32>
    %469 = arith.mulf %468, %411 : vector<2x12xf32>
    %470 = arith.addf %466, %469 : vector<2x12xf32>
    %c12_82 = arith.constant 12 : index
    %471 = memref.load %arg3[%c12_82] : memref<80xf32, #tpu.memory_space<smem>>
    %472 = vector.broadcast %471 : f32 to vector<2x12xf32>
    %473 = arith.mulf %472, %412 : vector<2x12xf32>
    %474 = arith.addf %470, %473 : vector<2x12xf32>
    %c13_83 = arith.constant 13 : index
    %475 = memref.load %arg3[%c13_83] : memref<80xf32, #tpu.memory_space<smem>>
    %476 = vector.broadcast %475 : f32 to vector<2x12xf32>
    %477 = arith.mulf %476, %413 : vector<2x12xf32>
    %478 = arith.addf %474, %477 : vector<2x12xf32>
    %c14_84 = arith.constant 14 : index
    %479 = memref.load %arg3[%c14_84] : memref<80xf32, #tpu.memory_space<smem>>
    %480 = vector.broadcast %479 : f32 to vector<2x12xf32>
    %481 = arith.mulf %480, %414 : vector<2x12xf32>
    %482 = arith.addf %478, %481 : vector<2x12xf32>
    %c15_85 = arith.constant 15 : index
    %483 = memref.load %arg3[%c15_85] : memref<80xf32, #tpu.memory_space<smem>>
    %484 = vector.broadcast %483 : f32 to vector<2x12xf32>
    %485 = arith.mulf %484, %417 : vector<2x12xf32>
    %486 = arith.addf %482, %485 : vector<2x12xf32>
    %c16_86 = arith.constant 16 : index
    %487 = memref.load %arg3[%c16_86] : memref<80xf32, #tpu.memory_space<smem>>
    %488 = vector.broadcast %487 : f32 to vector<2x12xf32>
    %489 = arith.mulf %488, %418 : vector<2x12xf32>
    %490 = arith.addf %486, %489 : vector<2x12xf32>
    %c17_87 = arith.constant 17 : index
    %491 = memref.load %arg3[%c17_87] : memref<80xf32, #tpu.memory_space<smem>>
    %492 = vector.broadcast %491 : f32 to vector<2x12xf32>
    %493 = arith.mulf %492, %419 : vector<2x12xf32>
    %494 = arith.addf %490, %493 : vector<2x12xf32>
    %c18_88 = arith.constant 18 : index
    %495 = memref.load %arg3[%c18_88] : memref<80xf32, #tpu.memory_space<smem>>
    %496 = vector.broadcast %495 : f32 to vector<2x12xf32>
    %497 = arith.mulf %496, %420 : vector<2x12xf32>
    %498 = arith.addf %494, %497 : vector<2x12xf32>
    %c19_89 = arith.constant 19 : index
    %499 = memref.load %arg3[%c19_89] : memref<80xf32, #tpu.memory_space<smem>>
    %500 = vector.broadcast %499 : f32 to vector<2x12xf32>
    %501 = arith.mulf %500, %421 : vector<2x12xf32>
    %502 = arith.addf %498, %501 : vector<2x12xf32>
    %c0_90 = arith.constant 0 : index
    %503 = memref.load %arg5[%c0_90] : memref<4xf32, #tpu.memory_space<smem>>
    %504 = vector.broadcast %503 : f32 to vector<2x12xf32>
    %505 = arith.addf %502, %504 : vector<2x12xf32>
    %c0_91 = arith.constant 0 : index
    %c0_92 = arith.constant 0 : index
    %c0_93 = arith.constant 0 : index
    %506 = vector.load %arg1[%c0_91, %c0_92, %c0_93] : memref<4x2x16xf32, #tpu.memory_space<vmem>>, vector<1x2x12xf32>
    %507 = vector.shape_cast %506 : vector<1x2x12xf32> to vector<2x12xf32>
    %508 = arith.addf %505, %507 : vector<2x12xf32>
    %cst_94 = arith.constant 0.000000e+00 : f32
    %509 = vector.broadcast %cst_94 : f32 to vector<2x12xf32>
    %510 = arith.maximumf %508, %509 : vector<2x12xf32>
    %c0_95 = arith.constant 0 : index
    %c0_96 = arith.constant 0 : index
    %c0_97 = arith.constant 0 : index
    %511 = vector.load %arg6[%c0_95, %c0_96, %c0_97] : memref<4x2x12xf32, #tpu.memory_space<vmem>>, vector<1x2x12xf32>
    %512 = vector.shape_cast %511 : vector<1x2x12xf32> to vector<2x12xf32>
    %513 = vector.shape_cast %510 : vector<2x12xf32> to vector<1x2x12xf32>
    tpu.vector_store %arg6[%c0_95, %c0_96, %c0_97], %513 {strides = array<i32>} : memref<4x2x12xf32, #tpu.memory_space<vmem>>, vector<1x2x12xf32>,
    %cst_98 = arith.constant 0.000000e+00 : f32
    %514 = vector.broadcast %cst_98 : f32 to vector<2x12xf32>
    %c20_99 = arith.constant 20 : index
    %515 = memref.load %arg3[%c20_99] : memref<80xf32, #tpu.memory_space<smem>>
    %516 = vector.broadcast %515 : f32 to vector<2x12xf32>
    %517 = arith.mulf %516, %396 : vector<2x12xf32>
    %518 = arith.addf %514, %517 : vector<2x12xf32>
    %c21_100 = arith.constant 21 : index
    %519 = memref.load %arg3[%c21_100] : memref<80xf32, #tpu.memory_space<smem>>
    %520 = vector.broadcast %519 : f32 to vector<2x12xf32>
    %521 = arith.mulf %520, %397 : vector<2x12xf32>
    %522 = arith.addf %518, %521 : vector<2x12xf32>
    %c22_101 = arith.constant 22 : index
    %523 = memref.load %arg3[%c22_101] : memref<80xf32, #tpu.memory_space<smem>>
    %524 = vector.broadcast %523 : f32 to vector<2x12xf32>
    %525 = arith.mulf %524, %398 : vector<2x12xf32>
    %526 = arith.addf %522, %525 : vector<2x12xf32>
    %c23_102 = arith.constant 23 : index
    %527 = memref.load %arg3[%c23_102] : memref<80xf32, #tpu.memory_space<smem>>
    %528 = vector.broadcast %527 : f32 to vector<2x12xf32>
    %529 = arith.mulf %528, %399 : vector<2x12xf32>
    %530 = arith.addf %526, %529 : vector<2x12xf32>
    %c24_103 = arith.constant 24 : index
    %531 = memref.load %arg3[%c24_103] : memref<80xf32, #tpu.memory_space<smem>>
    %532 = vector.broadcast %531 : f32 to vector<2x12xf32>
    %533 = arith.mulf %532, %400 : vector<2x12xf32>
    %534 = arith.addf %530, %533 : vector<2x12xf32>
    %c25_104 = arith.constant 25 : index
    %535 = memref.load %arg3[%c25_104] : memref<80xf32, #tpu.memory_space<smem>>
    %536 = vector.broadcast %535 : f32 to vector<2x12xf32>
    %537 = arith.mulf %536, %403 : vector<2x12xf32>
    %538 = arith.addf %534, %537 : vector<2x12xf32>
    %c26_105 = arith.constant 26 : index
    %539 = memref.load %arg3[%c26_105] : memref<80xf32, #tpu.memory_space<smem>>
    %540 = vector.broadcast %539 : f32 to vector<2x12xf32>
    %541 = arith.mulf %540, %404 : vector<2x12xf32>
    %542 = arith.addf %538, %541 : vector<2x12xf32>
    %c27_106 = arith.constant 27 : index
    %543 = memref.load %arg3[%c27_106] : memref<80xf32, #tpu.memory_space<smem>>
    %544 = vector.broadcast %543 : f32 to vector<2x12xf32>
    %545 = arith.mulf %544, %405 : vector<2x12xf32>
    %546 = arith.addf %542, %545 : vector<2x12xf32>
    %c28_107 = arith.constant 28 : index
    %547 = memref.load %arg3[%c28_107] : memref<80xf32, #tpu.memory_space<smem>>
    %548 = vector.broadcast %547 : f32 to vector<2x12xf32>
    %549 = arith.mulf %548, %406 : vector<2x12xf32>
    %550 = arith.addf %546, %549 : vector<2x12xf32>
    %c29_108 = arith.constant 29 : index
    %551 = memref.load %arg3[%c29_108] : memref<80xf32, #tpu.memory_space<smem>>
    %552 = vector.broadcast %551 : f32 to vector<2x12xf32>
    %553 = arith.mulf %552, %407 : vector<2x12xf32>
    %554 = arith.addf %550, %553 : vector<2x12xf32>
    %c30_109 = arith.constant 30 : index
    %555 = memref.load %arg3[%c30_109] : memref<80xf32, #tpu.memory_space<smem>>
    %556 = vector.broadcast %555 : f32 to vector<2x12xf32>
    %557 = arith.mulf %556, %410 : vector<2x12xf32>
    %558 = arith.addf %554, %557 : vector<2x12xf32>
    %c31_110 = arith.constant 31 : index
    %559 = memref.load %arg3[%c31_110] : memref<80xf32, #tpu.memory_space<smem>>
    %560 = vector.broadcast %559 : f32 to vector<2x12xf32>
    %561 = arith.mulf %560, %411 : vector<2x12xf32>
    %562 = arith.addf %558, %561 : vector<2x12xf32>
    %c32_111 = arith.constant 32 : index
    %563 = memref.load %arg3[%c32_111] : memref<80xf32, #tpu.memory_space<smem>>
    %564 = vector.broadcast %563 : f32 to vector<2x12xf32>
    %565 = arith.mulf %564, %412 : vector<2x12xf32>
    %566 = arith.addf %562, %565 : vector<2x12xf32>
    %c33_112 = arith.constant 33 : index
    %567 = memref.load %arg3[%c33_112] : memref<80xf32, #tpu.memory_space<smem>>
    %568 = vector.broadcast %567 : f32 to vector<2x12xf32>
    %569 = arith.mulf %568, %413 : vector<2x12xf32>
    %570 = arith.addf %566, %569 : vector<2x12xf32>
    %c34_113 = arith.constant 34 : index
    %571 = memref.load %arg3[%c34_113] : memref<80xf32, #tpu.memory_space<smem>>
    %572 = vector.broadcast %571 : f32 to vector<2x12xf32>
    %573 = arith.mulf %572, %414 : vector<2x12xf32>
    %574 = arith.addf %570, %573 : vector<2x12xf32>
    %c35_114 = arith.constant 35 : index
    %575 = memref.load %arg3[%c35_114] : memref<80xf32, #tpu.memory_space<smem>>
    %576 = vector.broadcast %575 : f32 to vector<2x12xf32>
    %577 = arith.mulf %576, %417 : vector<2x12xf32>
    %578 = arith.addf %574, %577 : vector<2x12xf32>
    %c36_115 = arith.constant 36 : index
    %579 = memref.load %arg3[%c36_115] : memref<80xf32, #tpu.memory_space<smem>>
    %580 = vector.broadcast %579 : f32 to vector<2x12xf32>
    %581 = arith.mulf %580, %418 : vector<2x12xf32>
    %582 = arith.addf %578, %581 : vector<2x12xf32>
    %c37_116 = arith.constant 37 : index
    %583 = memref.load %arg3[%c37_116] : memref<80xf32, #tpu.memory_space<smem>>
    %584 = vector.broadcast %583 : f32 to vector<2x12xf32>
    %585 = arith.mulf %584, %419 : vector<2x12xf32>
    %586 = arith.addf %582, %585 : vector<2x12xf32>
    %c38_117 = arith.constant 38 : index
    %587 = memref.load %arg3[%c38_117] : memref<80xf32, #tpu.memory_space<smem>>
    %588 = vector.broadcast %587 : f32 to vector<2x12xf32>
    %589 = arith.mulf %588, %420 : vector<2x12xf32>
    %590 = arith.addf %586, %589 : vector<2x12xf32>
    %c39_118 = arith.constant 39 : index
    %591 = memref.load %arg3[%c39_118] : memref<80xf32, #tpu.memory_space<smem>>
    %592 = vector.broadcast %591 : f32 to vector<2x12xf32>
    %593 = arith.mulf %592, %421 : vector<2x12xf32>
    %594 = arith.addf %590, %593 : vector<2x12xf32>
    %c1_119 = arith.constant 1 : index
    %595 = memref.load %arg5[%c1_119] : memref<4xf32, #tpu.memory_space<smem>>
    %596 = vector.broadcast %595 : f32 to vector<2x12xf32>
    %597 = arith.addf %594, %596 : vector<2x12xf32>
    %c1_120 = arith.constant 1 : index
    %c0_121 = arith.constant 0 : index
    %c0_122 = arith.constant 0 : index
    %598 = vector.load %arg1[%c1_120, %c0_121, %c0_122] : memref<4x2x16xf32, #tpu.memory_space<vmem>>, vector<1x2x12xf32>
    %599 = vector.shape_cast %598 : vector<1x2x12xf32> to vector<2x12xf32>
    %600 = arith.addf %597, %599 : vector<2x12xf32>
    %cst_123 = arith.constant 0.000000e+00 : f32
    %601 = vector.broadcast %cst_123 : f32 to vector<2x12xf32>
    %602 = arith.maximumf %600, %601 : vector<2x12xf32>
    %c1_124 = arith.constant 1 : index
    %c0_125 = arith.constant 0 : index
    %c0_126 = arith.constant 0 : index
    %603 = vector.load %arg6[%c1_124, %c0_125, %c0_126] : memref<4x2x12xf32, #tpu.memory_space<vmem>>, vector<1x2x12xf32>
    %604 = vector.shape_cast %603 : vector<1x2x12xf32> to vector<2x12xf32>
    %605 = vector.shape_cast %602 : vector<2x12xf32> to vector<1x2x12xf32>
    tpu.vector_store %arg6[%c1_124, %c0_125, %c0_126], %605 {strides = array<i32>} : memref<4x2x12xf32, #tpu.memory_space<vmem>>, vector<1x2x12xf32>,
    %cst_127 = arith.constant 0.000000e+00 : f32
    %606 = vector.broadcast %cst_127 : f32 to vector<2x12xf32>
    %c40_128 = arith.constant 40 : index
    %607 = memref.load %arg3[%c40_128] : memref<80xf32, #tpu.memory_space<smem>>
    %608 = vector.broadcast %607 : f32 to vector<2x12xf32>
    %609 = arith.mulf %608, %396 : vector<2x12xf32>
    %610 = arith.addf %606, %609 : vector<2x12xf32>
    %c41_129 = arith.constant 41 : index
    %611 = memref.load %arg3[%c41_129] : memref<80xf32, #tpu.memory_space<smem>>
    %612 = vector.broadcast %611 : f32 to vector<2x12xf32>
    %613 = arith.mulf %612, %397 : vector<2x12xf32>
    %614 = arith.addf %610, %613 : vector<2x12xf32>
    %c42_130 = arith.constant 42 : index
    %615 = memref.load %arg3[%c42_130] : memref<80xf32, #tpu.memory_space<smem>>
    %616 = vector.broadcast %615 : f32 to vector<2x12xf32>
    %617 = arith.mulf %616, %398 : vector<2x12xf32>
    %618 = arith.addf %614, %617 : vector<2x12xf32>
    %c43_131 = arith.constant 43 : index
    %619 = memref.load %arg3[%c43_131] : memref<80xf32, #tpu.memory_space<smem>>
    %620 = vector.broadcast %619 : f32 to vector<2x12xf32>
    %621 = arith.mulf %620, %399 : vector<2x12xf32>
    %622 = arith.addf %618, %621 : vector<2x12xf32>
    %c44_132 = arith.constant 44 : index
    %623 = memref.load %arg3[%c44_132] : memref<80xf32, #tpu.memory_space<smem>>
    %624 = vector.broadcast %623 : f32 to vector<2x12xf32>
    %625 = arith.mulf %624, %400 : vector<2x12xf32>
    %626 = arith.addf %622, %625 : vector<2x12xf32>
    %c45_133 = arith.constant 45 : index
    %627 = memref.load %arg3[%c45_133] : memref<80xf32, #tpu.memory_space<smem>>
    %628 = vector.broadcast %627 : f32 to vector<2x12xf32>
    %629 = arith.mulf %628, %403 : vector<2x12xf32>
    %630 = arith.addf %626, %629 : vector<2x12xf32>
    %c46_134 = arith.constant 46 : index
    %631 = memref.load %arg3[%c46_134] : memref<80xf32, #tpu.memory_space<smem>>
    %632 = vector.broadcast %631 : f32 to vector<2x12xf32>
    %633 = arith.mulf %632, %404 : vector<2x12xf32>
    %634 = arith.addf %630, %633 : vector<2x12xf32>
    %c47_135 = arith.constant 47 : index
    %635 = memref.load %arg3[%c47_135] : memref<80xf32, #tpu.memory_space<smem>>
    %636 = vector.broadcast %635 : f32 to vector<2x12xf32>
    %637 = arith.mulf %636, %405 : vector<2x12xf32>
    %638 = arith.addf %634, %637 : vector<2x12xf32>
    %c48_136 = arith.constant 48 : index
    %639 = memref.load %arg3[%c48_136] : memref<80xf32, #tpu.memory_space<smem>>
    %640 = vector.broadcast %639 : f32 to vector<2x12xf32>
    %641 = arith.mulf %640, %406 : vector<2x12xf32>
    %642 = arith.addf %638, %641 : vector<2x12xf32>
    %c49_137 = arith.constant 49 : index
    %643 = memref.load %arg3[%c49_137] : memref<80xf32, #tpu.memory_space<smem>>
    %644 = vector.broadcast %643 : f32 to vector<2x12xf32>
    %645 = arith.mulf %644, %407 : vector<2x12xf32>
    %646 = arith.addf %642, %645 : vector<2x12xf32>
    %c50_138 = arith.constant 50 : index
    %647 = memref.load %arg3[%c50_138] : memref<80xf32, #tpu.memory_space<smem>>
    %648 = vector.broadcast %647 : f32 to vector<2x12xf32>
    %649 = arith.mulf %648, %410 : vector<2x12xf32>
    %650 = arith.addf %646, %649 : vector<2x12xf32>
    %c51_139 = arith.constant 51 : index
    %651 = memref.load %arg3[%c51_139] : memref<80xf32, #tpu.memory_space<smem>>
    %652 = vector.broadcast %651 : f32 to vector<2x12xf32>
    %653 = arith.mulf %652, %411 : vector<2x12xf32>
    %654 = arith.addf %650, %653 : vector<2x12xf32>
    %c52_140 = arith.constant 52 : index
    %655 = memref.load %arg3[%c52_140] : memref<80xf32, #tpu.memory_space<smem>>
    %656 = vector.broadcast %655 : f32 to vector<2x12xf32>
    %657 = arith.mulf %656, %412 : vector<2x12xf32>
    %658 = arith.addf %654, %657 : vector<2x12xf32>
    %c53_141 = arith.constant 53 : index
    %659 = memref.load %arg3[%c53_141] : memref<80xf32, #tpu.memory_space<smem>>
    %660 = vector.broadcast %659 : f32 to vector<2x12xf32>
    %661 = arith.mulf %660, %413 : vector<2x12xf32>
    %662 = arith.addf %658, %661 : vector<2x12xf32>
    %c54_142 = arith.constant 54 : index
    %663 = memref.load %arg3[%c54_142] : memref<80xf32, #tpu.memory_space<smem>>
    %664 = vector.broadcast %663 : f32 to vector<2x12xf32>
    %665 = arith.mulf %664, %414 : vector<2x12xf32>
    %666 = arith.addf %662, %665 : vector<2x12xf32>
    %c55_143 = arith.constant 55 : index
    %667 = memref.load %arg3[%c55_143] : memref<80xf32, #tpu.memory_space<smem>>
    %668 = vector.broadcast %667 : f32 to vector<2x12xf32>
    %669 = arith.mulf %668, %417 : vector<2x12xf32>
    %670 = arith.addf %666, %669 : vector<2x12xf32>
    %c56_144 = arith.constant 56 : index
    %671 = memref.load %arg3[%c56_144] : memref<80xf32, #tpu.memory_space<smem>>
    %672 = vector.broadcast %671 : f32 to vector<2x12xf32>
    %673 = arith.mulf %672, %418 : vector<2x12xf32>
    %674 = arith.addf %670, %673 : vector<2x12xf32>
    %c57_145 = arith.constant 57 : index
    %675 = memref.load %arg3[%c57_145] : memref<80xf32, #tpu.memory_space<smem>>
    %676 = vector.broadcast %675 : f32 to vector<2x12xf32>
    %677 = arith.mulf %676, %419 : vector<2x12xf32>
    %678 = arith.addf %674, %677 : vector<2x12xf32>
    %c58_146 = arith.constant 58 : index
    %679 = memref.load %arg3[%c58_146] : memref<80xf32, #tpu.memory_space<smem>>
    %680 = vector.broadcast %679 : f32 to vector<2x12xf32>
    %681 = arith.mulf %680, %420 : vector<2x12xf32>
    %682 = arith.addf %678, %681 : vector<2x12xf32>
    %c59_147 = arith.constant 59 : index
    %683 = memref.load %arg3[%c59_147] : memref<80xf32, #tpu.memory_space<smem>>
    %684 = vector.broadcast %683 : f32 to vector<2x12xf32>
    %685 = arith.mulf %684, %421 : vector<2x12xf32>
    %686 = arith.addf %682, %685 : vector<2x12xf32>
    %c2_148 = arith.constant 2 : index
    %687 = memref.load %arg5[%c2_148] : memref<4xf32, #tpu.memory_space<smem>>
    %688 = vector.broadcast %687 : f32 to vector<2x12xf32>
    %689 = arith.addf %686, %688 : vector<2x12xf32>
    %c2_149 = arith.constant 2 : index
    %c0_150 = arith.constant 0 : index
    %c0_151 = arith.constant 0 : index
    %690 = vector.load %arg1[%c2_149, %c0_150, %c0_151] : memref<4x2x16xf32, #tpu.memory_space<vmem>>, vector<1x2x12xf32>
    %691 = vector.shape_cast %690 : vector<1x2x12xf32> to vector<2x12xf32>
    %692 = arith.addf %689, %691 : vector<2x12xf32>
    %cst_152 = arith.constant 0.000000e+00 : f32
    %693 = vector.broadcast %cst_152 : f32 to vector<2x12xf32>
    %694 = arith.maximumf %692, %693 : vector<2x12xf32>
    %c2_153 = arith.constant 2 : index
    %c0_154 = arith.constant 0 : index
    %c0_155 = arith.constant 0 : index
    %695 = vector.load %arg6[%c2_153, %c0_154, %c0_155] : memref<4x2x12xf32, #tpu.memory_space<vmem>>, vector<1x2x12xf32>
    %696 = vector.shape_cast %695 : vector<1x2x12xf32> to vector<2x12xf32>
    %697 = vector.shape_cast %694 : vector<2x12xf32> to vector<1x2x12xf32>
    tpu.vector_store %arg6[%c2_153, %c0_154, %c0_155], %697 {strides = array<i32>} : memref<4x2x12xf32, #tpu.memory_space<vmem>>, vector<1x2x12xf32>,
    %cst_156 = arith.constant 0.000000e+00 : f32
    %698 = vector.broadcast %cst_156 : f32 to vector<2x12xf32>
    %c60_157 = arith.constant 60 : index
    %699 = memref.load %arg3[%c60_157] : memref<80xf32, #tpu.memory_space<smem>>
    %700 = vector.broadcast %699 : f32 to vector<2x12xf32>
    %701 = arith.mulf %700, %396 : vector<2x12xf32>
    %702 = arith.addf %698, %701 : vector<2x12xf32>
    %c61_158 = arith.constant 61 : index
    %703 = memref.load %arg3[%c61_158] : memref<80xf32, #tpu.memory_space<smem>>
    %704 = vector.broadcast %703 : f32 to vector<2x12xf32>
    %705 = arith.mulf %704, %397 : vector<2x12xf32>
    %706 = arith.addf %702, %705 : vector<2x12xf32>
    %c62_159 = arith.constant 62 : index
    %707 = memref.load %arg3[%c62_159] : memref<80xf32, #tpu.memory_space<smem>>
    %708 = vector.broadcast %707 : f32 to vector<2x12xf32>
    %709 = arith.mulf %708, %398 : vector<2x12xf32>
    %710 = arith.addf %706, %709 : vector<2x12xf32>
    %c63_160 = arith.constant 63 : index
    %711 = memref.load %arg3[%c63_160] : memref<80xf32, #tpu.memory_space<smem>>
    %712 = vector.broadcast %711 : f32 to vector<2x12xf32>
    %713 = arith.mulf %712, %399 : vector<2x12xf32>
    %714 = arith.addf %710, %713 : vector<2x12xf32>
    %c64_161 = arith.constant 64 : index
    %715 = memref.load %arg3[%c64_161] : memref<80xf32, #tpu.memory_space<smem>>
    %716 = vector.broadcast %715 : f32 to vector<2x12xf32>
    %717 = arith.mulf %716, %400 : vector<2x12xf32>
    %718 = arith.addf %714, %717 : vector<2x12xf32>
    %c65_162 = arith.constant 65 : index
    %719 = memref.load %arg3[%c65_162] : memref<80xf32, #tpu.memory_space<smem>>
    %720 = vector.broadcast %719 : f32 to vector<2x12xf32>
    %721 = arith.mulf %720, %403 : vector<2x12xf32>
    %722 = arith.addf %718, %721 : vector<2x12xf32>
    %c66_163 = arith.constant 66 : index
    %723 = memref.load %arg3[%c66_163] : memref<80xf32, #tpu.memory_space<smem>>
    %724 = vector.broadcast %723 : f32 to vector<2x12xf32>
    %725 = arith.mulf %724, %404 : vector<2x12xf32>
    %726 = arith.addf %722, %725 : vector<2x12xf32>
    %c67_164 = arith.constant 67 : index
    %727 = memref.load %arg3[%c67_164] : memref<80xf32, #tpu.memory_space<smem>>
    %728 = vector.broadcast %727 : f32 to vector<2x12xf32>
    %729 = arith.mulf %728, %405 : vector<2x12xf32>
    %730 = arith.addf %726, %729 : vector<2x12xf32>
    %c68_165 = arith.constant 68 : index
    %731 = memref.load %arg3[%c68_165] : memref<80xf32, #tpu.memory_space<smem>>
    %732 = vector.broadcast %731 : f32 to vector<2x12xf32>
    %733 = arith.mulf %732, %406 : vector<2x12xf32>
    %734 = arith.addf %730, %733 : vector<2x12xf32>
    %c69_166 = arith.constant 69 : index
    %735 = memref.load %arg3[%c69_166] : memref<80xf32, #tpu.memory_space<smem>>
    %736 = vector.broadcast %735 : f32 to vector<2x12xf32>
    %737 = arith.mulf %736, %407 : vector<2x12xf32>
    %738 = arith.addf %734, %737 : vector<2x12xf32>
    %c70_167 = arith.constant 70 : index
    %739 = memref.load %arg3[%c70_167] : memref<80xf32, #tpu.memory_space<smem>>
    %740 = vector.broadcast %739 : f32 to vector<2x12xf32>
    %741 = arith.mulf %740, %410 : vector<2x12xf32>
    %742 = arith.addf %738, %741 : vector<2x12xf32>
    %c71_168 = arith.constant 71 : index
    %743 = memref.load %arg3[%c71_168] : memref<80xf32, #tpu.memory_space<smem>>
    %744 = vector.broadcast %743 : f32 to vector<2x12xf32>
    %745 = arith.mulf %744, %411 : vector<2x12xf32>
    %746 = arith.addf %742, %745 : vector<2x12xf32>
    %c72_169 = arith.constant 72 : index
    %747 = memref.load %arg3[%c72_169] : memref<80xf32, #tpu.memory_space<smem>>
    %748 = vector.broadcast %747 : f32 to vector<2x12xf32>
    %749 = arith.mulf %748, %412 : vector<2x12xf32>
    %750 = arith.addf %746, %749 : vector<2x12xf32>
    %c73_170 = arith.constant 73 : index
    %751 = memref.load %arg3[%c73_170] : memref<80xf32, #tpu.memory_space<smem>>
    %752 = vector.broadcast %751 : f32 to vector<2x12xf32>
    %753 = arith.mulf %752, %413 : vector<2x12xf32>
    %754 = arith.addf %750, %753 : vector<2x12xf32>
    %c74_171 = arith.constant 74 : index
    %755 = memref.load %arg3[%c74_171] : memref<80xf32, #tpu.memory_space<smem>>
    %756 = vector.broadcast %755 : f32 to vector<2x12xf32>
    %757 = arith.mulf %756, %414 : vector<2x12xf32>
    %758 = arith.addf %754, %757 : vector<2x12xf32>
    %c75_172 = arith.constant 75 : index
    %759 = memref.load %arg3[%c75_172] : memref<80xf32, #tpu.memory_space<smem>>
    %760 = vector.broadcast %759 : f32 to vector<2x12xf32>
    %761 = arith.mulf %760, %417 : vector<2x12xf32>
    %762 = arith.addf %758, %761 : vector<2x12xf32>
    %c76_173 = arith.constant 76 : index
    %763 = memref.load %arg3[%c76_173] : memref<80xf32, #tpu.memory_space<smem>>
    %764 = vector.broadcast %763 : f32 to vector<2x12xf32>
    %765 = arith.mulf %764, %418 : vector<2x12xf32>
    %766 = arith.addf %762, %765 : vector<2x12xf32>
    %c77_174 = arith.constant 77 : index
    %767 = memref.load %arg3[%c77_174] : memref<80xf32, #tpu.memory_space<smem>>
    %768 = vector.broadcast %767 : f32 to vector<2x12xf32>
    %769 = arith.mulf %768, %419 : vector<2x12xf32>
    %770 = arith.addf %766, %769 : vector<2x12xf32>
    %c78_175 = arith.constant 78 : index
    %771 = memref.load %arg3[%c78_175] : memref<80xf32, #tpu.memory_space<smem>>
    %772 = vector.broadcast %771 : f32 to vector<2x12xf32>
    %773 = arith.mulf %772, %420 : vector<2x12xf32>
    %774 = arith.addf %770, %773 : vector<2x12xf32>
    %c79_176 = arith.constant 79 : index
    %775 = memref.load %arg3[%c79_176] : memref<80xf32, #tpu.memory_space<smem>>
    %776 = vector.broadcast %775 : f32 to vector<2x12xf32>
    %777 = arith.mulf %776, %421 : vector<2x12xf32>
    %778 = arith.addf %774, %777 : vector<2x12xf32>
    %c3_177 = arith.constant 3 : index
    %779 = memref.load %arg5[%c3_177] : memref<4xf32, #tpu.memory_space<smem>>
    %780 = vector.broadcast %779 : f32 to vector<2x12xf32>
    %781 = arith.addf %778, %780 : vector<2x12xf32>
    %c3_178 = arith.constant 3 : index
    %c0_179 = arith.constant 0 : index
    %c0_180 = arith.constant 0 : index
    %782 = vector.load %arg1[%c3_178, %c0_179, %c0_180] : memref<4x2x16xf32, #tpu.memory_space<vmem>>, vector<1x2x12xf32>
    %783 = vector.shape_cast %782 : vector<1x2x12xf32> to vector<2x12xf32>
    %784 = arith.addf %781, %783 : vector<2x12xf32>
    %cst_181 = arith.constant 0.000000e+00 : f32
    %785 = vector.broadcast %cst_181 : f32 to vector<2x12xf32>
    %786 = arith.maximumf %784, %785 : vector<2x12xf32>
    %c3_182 = arith.constant 3 : index
    %c0_183 = arith.constant 0 : index
    %c0_184 = arith.constant 0 : index
    %787 = vector.load %arg6[%c3_182, %c0_183, %c0_184] : memref<4x2x12xf32, #tpu.memory_space<vmem>>, vector<1x2x12xf32>
    %788 = vector.shape_cast %787 : vector<1x2x12xf32> to vector<2x12xf32>
    %789 = vector.shape_cast %786 : vector<2x12xf32> to vector<1x2x12xf32>
    tpu.vector_store %arg6[%c3_182, %c0_183, %c0_184], %789 {strides = array<i32>} : memref<4x2x12xf32, #tpu.memory_space<vmem>>, vector<1x2x12xf32>,
    return
  }
  func.func @transform_0(%arg0: i32) -> (i32, i32, i32) {
    %c0_i32 = arith.constant 0 : i32
    %c0_i32_0 = arith.constant 0 : i32
    %c0_i32_1 = arith.constant 0 : i32
    return %c0_i32, %arg0, %c0_i32_0 : i32, i32, i32
  }
  func.func @transform_1(%arg0: i32) -> i32 {
    %c0_i32 = arith.constant 0 : i32
    %c0_i32_0 = arith.constant 0 : i32
    return %c0_i32 : i32
  }
  func.func @transform_2(%arg0: i32) -> i32 {
    %c0_i32 = arith.constant 0 : i32
    %c0_i32_0 = arith.constant 0 : i32
    return %c0_i32 : i32
  }
  func.func @transform_3(%arg0: i32) -> i32 {
    %c0_i32 = arith.constant 0 : i32
    %c0_i32_0 = arith.constant 0 : i32
    return %c0_i32 : i32
  }
  func.func @transform_4(%arg0: i32) -> i32 {
    %c0_i32 = arith.constant 0 : i32
    %c0_i32_0 = arith.constant 0 : i32
    return %c0_i32 : i32
  }
  func.func @transform_5(%arg0: i32) -> (i32, i32, i32) {
    %c0_i32 = arith.constant 0 : i32
    %c0_i32_0 = arith.constant 0 : i32
    %c0_i32_1 = arith.constant 0 : i32
    return %c0_i32, %arg0, %c0_i32_0 : i32, i32, i32
  }
}

</mosaic_0001>

<bundles_post_ra>
// kernel: tpu_custom_call.1
= control target key start
LH: loop header
LB: loop body
LE: loop exit
PB: predicated region body
PF: predicated region fallthrough
CT: control target
= control target key end

     0   :  { %10 = vsyncpa [#allocation5], 0  ;;  %s2145_s0 = inlined_call_operand.hbm [shape: f32[4,2,16], index: 0, kind: input, shape index: {}]   ;;  %s2146_s1 = inlined_call_operand.vmem [shape: f32[80], index: 1, kind: input, shape index: {}]   ;;  %s2147_s2 = inlined_call_operand.vmem [shape: f32[80], index: 2, kind: input, shape index: {}]   ;;  %s2148_s3 = inlined_call_operand.vmem [shape: f32[4], index: 3, kind: input, shape index: {}]   ;;  %s2149_s4 = inlined_call_operand.vmem [shape: f32[4], index: 4, kind: input, shape index: {}]   ;;  %s2150_s5 = inlined_call_operand.hbm [shape: f32[4,2,12], index: 5, kind: output, shape index: {}]  }
   0x1   :  { %11 = vsyncpa [#allocation7], 0 }
   0x2   :  { %12 = vsyncpa [#allocation10], 0 }
   0x3   :  { %13 = vsyncpa [#allocation13], 0  ;;  %s43_s20 = sshll.u32 %s2147_s2, 4  ;;  %s44_s20 = int_to_ptr.vmem [resolvable:$true] %s43_s20 }
   0x4   :  { %14 = vsyncpa [#allocation6], 0  ;;  %s1563_s21 = scalar_lea.vmem %s44_s20, 16  ;;  %p1568_p1 = scmp.lt.s32.totalorder %s44_s20, %s44_s20 }
   0x5   :  { %p1564_p0 = scmp.ne.s32.totalorder %s44_s20, %s1563_s21  ;;  %p1569_p2 = scmp.lt.s32.totalorder %s1563_s21, %s1563_s21 }
   0x7   :  { %p1570_p3 = por %p1569_p2, %p1568_p1 }
   0x9   :  { %p1571_p4 = pnand %p1570_p3, %p1564_p0 }
   0xb   :  { %1574 = shalt.err (!%p1571_p4)
}
   0xc   :  { %s1665_s22 = smov [#allocation9]   ;;  %s1666_s23 = smov [#allocation4]  }
   0xd   :  { %46 = dma.vmem_to_smem %s44_s20, 16, %s1665_s22, [#allocation10]  }
   0xe   :  { %s20_s24 = sshll.u32 %s1666_s23, 4  ;;  %s1575_s27 = scalar_lea.hbm %s2145_s0, 128  ;;  %s21_s24 = int_to_ptr.vmem [resolvable:$true] %s20_s24 }
   0xf   :  { %p1576_p5 = scmp.ne.s32.totalorder %s2145_s0, %s1575_s27  ;;  %p1579_p6 = scmp.lt.u32.totalorder %s1575_s27, %s2145_s0 }
  0x11   :  { %p1581_p7 = pnand %p1579_p6, %p1576_p5 }
  0x13   :  { %1584 = shalt.err (!%p1581_p7)
}
  0x14   :  { %s1585_s6 = scalar_lea.vmem %s21_s24, 128  ;;  %p1590_p9 = scmp.lt.s32.totalorder %s21_s24, %s21_s24 }
  0x15   :  { %p1586_p8 = scmp.ne.s32.totalorder %s21_s24, %s1585_s6  ;;  %p1591_p10 = scmp.lt.s32.totalorder %s1585_s6, %s1585_s6 }
  0x17   :  { %p1592_p11 = por %p1591_p10, %p1590_p9 }
  0x19   :  { %p1593_p12 = pnand %p1592_p11, %p1586_p8 }
  0x1b   :  { %1596 = shalt.err (!%p1593_p12)
}
  0x1c   :  { %s1667_s7 = smov 32   ;;  %s1668_s8 = smov 2  }
  0x1d   :  { %26 = dma.hbm_to_vmem [thread:$0]  %s2145_s0, 128, %s21_s24, [#allocation5], %s1667_s7, %s1667_s7, %s1668_s8  }
  0x1e   :  { %s33_s13 = sshll.u32 %s2146_s1, 4  ;;  %s53_s16 = sshll.u32 %s2148_s3, 4  ;;  %s34_s13 = int_to_ptr.vmem [resolvable:$true] %s33_s13  ;;  %s54_s16 = int_to_ptr.vmem [resolvable:$true] %s53_s16 }
  0x1f   :  { %s1597_s17 = scalar_lea.vmem %s34_s13, 16  ;;  %p1602_p0 = scmp.lt.s32.totalorder %s34_s13, %s34_s13 }
  0x20   :  { %p1598_p13 = scmp.ne.s32.totalorder %s34_s13, %s1597_s17  ;;  %p1603_p1 = scmp.lt.s32.totalorder %s1597_s17, %s1597_s17 }
  0x22   :  { %p1604_p2 = por %p1603_p1, %p1602_p0 }
  0x24   :  { %p1605_p3 = pnand %p1604_p2, %p1598_p13 }
  0x26   :  { %1608 = shalt.err (!%p1605_p3)
}
  0x27   :  { %s1669_s18 = smov [#allocation8]   ;;  %s1609_s0 = scalar_lea.vmem %s54_s16, 16 }
  0x28   :  { %36 = dma.vmem_to_smem %s34_s13, 16, %s1669_s18, [#allocation7]  }
  0x29   :  { %p1610_p4 = scmp.ne.s32.totalorder %s54_s16, %s1609_s0  ;;  %p1614_p5 = scmp.lt.s32.totalorder %s54_s16, %s54_s16 }
  0x2a   :  { %p1615_p6 = scmp.lt.s32.totalorder %s1609_s0, %s1609_s0 }
  0x2c   :  { %p1616_p7 = por %p1615_p6, %p1614_p5 }
  0x2e   :  { %p1617_p8 = pnand %p1616_p7, %p1610_p4 }
  0x30   :  { %1620 = shalt.err (!%p1617_p8)
}
  0x31   :  { %s1670_s1 = smov [#allocation11]   ;;  %s63_s20 = sshll.u32 %s2149_s4, 4  ;;  %s64_s20 = int_to_ptr.vmem [resolvable:$true] %s63_s20 }
  0x32   :  { %56 = dma.vmem_to_smem %s54_s16, 16, %s1670_s1, [#allocation10]  }
  0x33   :  { %s1621_s21 = scalar_lea.vmem %s64_s20, 16  ;;  %p1626_p10 = scmp.lt.s32.totalorder %s64_s20, %s64_s20 }
  0x34   :  { %p1622_p9 = scmp.ne.s32.totalorder %s64_s20, %s1621_s21  ;;  %p1627_p11 = scmp.lt.s32.totalorder %s1621_s21, %s1621_s21 }
  0x36   :  { %p1628_p12 = por %p1627_p11, %p1626_p10 }
  0x38   :  { %p1629_p13 = pnand %p1628_p12, %p1622_p9 }
  0x3a   :  { %1632 = shalt.err (!%p1629_p13)
}
  0x3b   :  { %s1671_s22 = smov [#allocation12]  }
  0x3c   :  { %66 = dma.vmem_to_smem %s64_s20, 16, %s1671_s22, [#allocation13]  }
  0x3d   :  { %1655 = dma.done.wait [#allocation5], 128  }
  0x3e   :  { %1656 = vsyncadd [#allocation5], 4294967168 }
  0x3f   :  { %1657 = dma.done.wait [#allocation7], 16  }
  0x40   :  { %1658 = vsyncadd [#allocation7], 4294967280 }
  0x41   :  { %1659 = dma.done.wait [#allocation10], 32  }
  0x42   :  { %1660 = vsyncadd [#allocation10], 4294967264 }
  0x43   :  { %1661 = dma.done.wait [#allocation13], 16  }
  0x44   :  { %1662 = vsyncadd [#allocation13], 4294967280 }
  0x45   :  { %82 = sfence }
  0x46   :  { %v102_v0 = vld [vmem:[#allocation4] sm:$0x3]  ;;  %s1672_s4 = smov 1   ;;  %v104_v1 = vld [vmem:[#allocation4 + $0x4] sm:$0x3]  ;;  %vm83_vm0 = vcmask 1024  }
  0x47   :  { %110 = vrot.lane.b32.xlu0 %v102_v0, %s1672_s4  ;;  %v103_v2 = vld [vmem:[#allocation4 + $0x2] sm:$0x3]  ;;  %114 = vrot.lane.b32.xlu1 %v104_v1, %s1672_s4  ;;  %v1673_v3 = vmov 0.0   ;;  %vm88_vm1 = vcmask 140424   ;;  %v105_v4 = vld [vmem:[#allocation4 + $0x6] sm:$0x3] }
  0x48   :  { %84 = vst.msk [vmem:[#allocation2] sm:$0x3] %vm83_vm0, %v1673_v3  ;;  %85 = vst.msk [vmem:[#allocation2 + $0x2] sm:$0x3] %vm83_vm0, %v1673_v3  ;;  %vm122_vm2 = vcmask 132104   ;;  %s1386_s23 = sld [smem:[#allocation8 + $0x2]] }
  0x49   :  { %86 = vst.msk [vmem:[#allocation2 + $0x4] sm:$0x3] %vm83_vm0, %v1673_v3  ;;  %87 = vst.msk [vmem:[#allocation2 + $0x6] sm:$0x3] %vm83_vm0, %v1673_v3  ;;  %s1385_s24 = sld [smem:[#allocation8 + $0x1]]  ;;  %s1388_s25 = sld [smem:[#allocation8 + $0x4]] }
  0x4a   :  { %93 = vst.msk [vmem:[#allocation3] sm:$0x3] %vm83_vm0, %v1673_v3  ;;  %94 = vst.msk [vmem:[#allocation3 + $0x2] sm:$0x3] %vm83_vm0, %v1673_v3  ;;  %s1387_s26 = sld [smem:[#allocation8 + $0x3]]  ;;  %s1390_s27 = sld [smem:[#allocation8 + $0x6]] }
  0x4b   :  { %95 = vst.msk [vmem:[#allocation3 + $0x4] sm:$0x3] %vm83_vm0, %v1673_v3  ;;  %96 = vst.msk [vmem:[#allocation3 + $0x6] sm:$0x3] %vm83_vm0, %v1673_v3  ;;  %112 = vrot.lane.b32.xlu0 %v103_v2, %s1672_s4  ;;  %116 = vrot.lane.b32.xlu1 %v105_v4, %s1672_s4  ;;  %s1405_s28 = sld [smem:[#allocation8 + $0x15]]  ;;  %s1406_s2 = sld [smem:[#allocation8 + $0x16]] }
  0x4c   :  { %89 = vst.msk [vmem:[#allocation2] sm:$0x3] %vm88_vm1, %v1673_v3  ;;  %90 = vst.msk [vmem:[#allocation2 + $0x2] sm:$0x3] %vm88_vm1, %v1673_v3  ;;  %s1391_s29 = sld [smem:[#allocation8 + $0x7]]  ;;  %s1674_s30 = smov 126  }
  0x4d   :  { %91 = vst.msk [vmem:[#allocation2 + $0x4] sm:$0x3] %vm88_vm1, %v1673_v3  ;;  %92 = vst.msk [vmem:[#allocation2 + $0x6] sm:$0x3] %vm88_vm1, %v1673_v3  ;;  %s1675_s6 = smov 127   ;;  %s1407_s9 = sld [smem:[#allocation8 + $0x17]] }
  0x4e   :  { %v147_v9 = vstv %s1386_s23  ;;  %s1392_s10 = sld [smem:[#allocation8 + $0x8]]  ;;  %s1676_s11 = smov 124   ;;  %vm97_vm3 = vcmask 124024   ;;  %vm286_vm4 = vcmask 115720   ;;  %vm904_vm5 = vcmask 91136  }
  0x4f   :  { %v139_v10 = vstv %s1385_s24  ;;  %v163_v14 = vstv %s1388_s25  ;;  %s1677_s12 = smov 125   ;;  %s1408_s13 = sld [smem:[#allocation8 + $0x18]]  ;;  %98 = vst.msk [vmem:[#allocation3] sm:$0x3] %vm97_vm3, %v1673_v3  ;;  %99 = vst.msk [vmem:[#allocation3 + $0x2] sm:$0x3] %vm97_vm3, %v1673_v3 }
  0x50   :  { %v155_v15 = vstv %s1387_s26  ;;  %v175_v17 = vstv %s1390_s27  ;;  %s1393_s14 = sld [smem:[#allocation8 + $0x9]]  ;;  %s1395_s15 = sld [smem:[#allocation8 + $0xb]]  ;;  %100 = vst.msk [vmem:[#allocation3 + $0x4] sm:$0x3] %vm97_vm3, %v1673_v3  ;;  %101 = vst.msk [vmem:[#allocation3 + $0x6] sm:$0x3] %vm97_vm3, %v1673_v3 }
  0x51   :  { %v293_v20 = vstv %s1405_s28  ;;  %v301_v23 = vstv %s1406_s2  ;;  %s1410_s16 = sld [smem:[#allocation8 + $0x1a]]  ;;  %s1396_s17 = sld [smem:[#allocation8 + $0xc]] }
  0x52   :  { %v183_v24 = vstv %s1391_s29  ;;  %s1426_s18 = sld [smem:[#allocation8 + $0x29]]  ;;  %s1427_s0 = sld [smem:[#allocation8 + $0x2a]] }
  0x53   :  { %v309_v27 = vstv %s1407_s9  ;;  %s1411_s1 = sld [smem:[#allocation8 + $0x1b]]  ;;  %s1412_s3 = sld [smem:[#allocation8 + $0x1c]] }
  0x54   :  { %v191_v28 = vstv %s1392_s10  ;;  %s1397_s19 = sld [smem:[#allocation8 + $0xd]]  ;;  %s1398_s20 = sld [smem:[#allocation8 + $0xe]] }
  0x55   :  { %v317_v31 = vstv %s1408_s13  ;;  %s1428_s21 = sld [smem:[#allocation8 + $0x2b]]  ;;  %s1429_s22 = sld [smem:[#allocation8 + $0x2c]] }
  0x56   :  { %v199_v32 = vstv %s1393_s14  ;;  %v211_v34 = vstv %s1395_s15  ;;  %s1413_s23 = sld [smem:[#allocation8 + $0x1d]]  ;;  %s1400_s24 = sld [smem:[#allocation8 + $0x10]] }
  0x57   :  { %v329_v37 = vstv %s1410_s16  ;;  %v219_v40 = vstv %s1396_s17  ;;  %s1415_s25 = sld [smem:[#allocation8 + $0x1f]]  ;;  %s1447_s26 = sld [smem:[#allocation8 + $0x3d]] }
  0x58   :  { %v447_v41 = vstv %s1426_s18  ;;  %v455_v44 = vstv %s1427_s0  ;;  %s1431_s27 = sld [smem:[#allocation8 + $0x2e]]  ;;  %s1416_s28 = sld [smem:[#allocation8 + $0x20]] }
  0x59   :  { %v337_v45 = vstv %s1411_s1  ;;  %v345_v48 = vstv %s1412_s3  ;;  %s1401_s2 = sld [smem:[#allocation8 + $0x11]]  ;;  %s1448_s29 = sld [smem:[#allocation8 + $0x3e]] }
  0x5a   :  { %v227_v49 = vstv %s1397_s19  ;;  %v235_v52 = vstv %s1398_s20  ;;  %s1432_s9 = sld [smem:[#allocation8 + $0x2f]]  ;;  %s1417_s10 = sld [smem:[#allocation8 + $0x21]] }
  0x5b   :  { %v463_v53 = vstv %s1428_s21  ;;  %v471_v56 = vstv %s1429_s22  ;;  %s1402_s13 = sld [smem:[#allocation8 + $0x12]]  ;;  %s1449_s14 = sld [smem:[#allocation8 + $0x3f]] }
  0x5c   :  { %v353_v57 = vstv %s1413_s23  ;;  %v247_v59 = vstv %s1400_s24  ;;  %s1433_s15 = sld [smem:[#allocation8 + $0x30]]  ;;  %s1418_s16 = sld [smem:[#allocation8 + $0x22]] }
  0x5d   :  { %v365_v62 = vstv %s1415_s25  ;;  %v601_v1 = vstv %s1447_s26  ;;  %s1403_s17 = sld [smem:[#allocation8 + $0x13]]  ;;  %s1450_s18 = sld [smem:[#allocation8 + $0x40]] }
  0x5e   :  { %v483_v2 = vstv %s1431_s27  ;;  %s1434_s0 = sld [smem:[#allocation8 + $0x31]]  ;;  %s1436_s1 = sld [smem:[#allocation8 + $0x33]] }
  0x5f   :  { %s1420_s3 = sld [smem:[#allocation8 + $0x24]]  ;;  %s1421_s19 = sld [smem:[#allocation8 + $0x25]] }
  0x60   :  { %s1452_s20 = sld [smem:[#allocation8 + $0x42]]  ;;  %s1453_s21 = sld [smem:[#allocation8 + $0x43]] }
  0x61   :  { %s1437_s22 = sld [smem:[#allocation8 + $0x34]]  ;;  %s1438_s23 = sld [smem:[#allocation8 + $0x35]] }
  0x62   :  { %s1422_s24 = sld [smem:[#allocation8 + $0x26]]  ;;  %s1423_s25 = sld [smem:[#allocation8 + $0x27]] }
  0x63   :  { %s1454_s26 = sld [smem:[#allocation8 + $0x44]]  ;;  %s1455_s27 = sld [smem:[#allocation8 + $0x45]] }
  0xb9   :  { %v111_v5 = vpop.permute.xlu0 %110  ;;  %v115_v6 = vpop.permute.xlu1 %114 }
  0xba   :  { %123 = vst.msk [vmem:[#allocation2] sm:$0x3] %vm122_vm2, %v111_v5  ;;  %125 = vst.msk [vmem:[#allocation2 + $0x4] sm:$0x3] %vm122_vm2, %v115_v6  ;;  %v373_v6 = vstv %s1416_s28  ;;  %s1439_s28 = sld [smem:[#allocation8 + $0x36]] }
  0xbd   :  { %v113_v7 = vpop.permute.xlu0 %112  ;;  %v117_v8 = vpop.permute.xlu1 %116 }
  0xbe   :  { %124 = vst.msk [vmem:[#allocation2 + $0x2] sm:$0x3] %vm122_vm2, %v113_v7  ;;  %126 = vst.msk [vmem:[#allocation2 + $0x6] sm:$0x3] %vm122_vm2, %v117_v8  ;;  %v255_v7 = vstv %s1401_s2  ;;  %s1457_s2 = sld [smem:[#allocation8 + $0x47]] }
  0xc1   :  { %v1756_v11 = vld [vmem:[#allocation2] sm:$0x3]  ;;  %v1780_v33 = vld [vmem:[#allocation2 + $0x4] sm:$0x3] }
  0xc2   :  { %v148_v12 = vmul.f32 %v147_v9, %v1756_v11  ;;  %v140_v13 = vmul.f32 %v139_v10, %v1756_v11  ;;  %v164_v18 = vmul.f32 %v163_v14, %v1756_v11  ;;  %v156_v19 = vmul.f32 %v155_v15, %v1756_v11 }
  0xc3   :  { %v294_v22 = vmul.f32 %v293_v20, %v1756_v11  ;;  %v302_v25 = vmul.f32 %v301_v23, %v1756_v11  ;;  %v310_v29 = vmul.f32 %v309_v27, %v1756_v11  ;;  %v318_v35 = vmul.f32 %v317_v31, %v1756_v11 }
  0xc4   :  { %150 = vrot.lane.b32.xlu1 %v148_v12, %s1674_s30  ;;  %142 = vrot.lane.b32.xlu0 %v140_v13, %s1675_s6  ;;  %v212_v38 = vmul.f32 %v211_v34, %v1780_v33  ;;  %v220_v42 = vmul.f32 %v219_v40, %v1780_v33  ;;  %v448_v43 = vmul.f32 %v447_v41, %v1756_v11  ;;  %v609_v10 = vstv %s1448_s29  ;;  %s1441_s29 = sld [smem:[#allocation8 + $0x38]] }
  0xc5   :  { %v1762_v16 = vld [vmem:[#allocation2 + $0x2] sm:$0x3]  ;;  %v456_v46 = vmul.f32 %v455_v44, %v1756_v11  ;;  %v228_v51 = vmul.f32 %v227_v49, %v1780_v33  ;;  %v236_v54 = vmul.f32 %v235_v52, %v1780_v33  ;;  %v464_v55 = vmul.f32 %v463_v53, %v1756_v11  ;;  %v1806_v58 = vld [vmem:[#allocation2 + $0x6] sm:$0x3] }
  0xc6   :  { %v176_v21 = vmul.f32 %v175_v17, %v1762_v16  ;;  %v184_v26 = vmul.f32 %v183_v24, %v1762_v16  ;;  %v192_v30 = vmul.f32 %v191_v28, %v1762_v16  ;;  %v200_v36 = vmul.f32 %v199_v32, %v1762_v16 }
  0xc7   :  { %v330_v39 = vmul.f32 %v329_v37, %v1762_v16  ;;  %v338_v47 = vmul.f32 %v337_v45, %v1762_v16  ;;  %v346_v50 = vmul.f32 %v345_v48, %v1762_v16  ;;  %v472_v60 = vmul.f32 %v471_v56, %v1756_v11 }
  0xc8   :  { %166 = vrot.lane.b32.xlu1 %v164_v18, %s1676_s11  ;;  %158 = vrot.lane.b32.xlu0 %v156_v19, %s1677_s12  ;;  %v354_v61 = vmul.f32 %v353_v57, %v1762_v16  ;;  %v248_v63 = vmul.f32 %v247_v59, %v1806_v58  ;;  %v366_v0 = vmul.f32 %v365_v62, %v1780_v33  ;;  %v491_v12 = vstv %s1432_s9  ;;  %s1458_s9 = sld [smem:[#allocation8 + $0x48]] }
  0xc9   :  { %v602_v4 = vmul.f32 %v601_v1, %v1756_v11  ;;  %v484_v5 = vmul.f32 %v483_v2, %v1762_v16  ;;  %v374_v8 = vmul.f32 %v373_v6, %v1780_v33  ;;  %v256_v9 = vmul.f32 %v255_v7, %v1806_v58 }
  0xca   :  { %v610_v13 = vmul.f32 %v609_v10, %v1756_v11  ;;  %v492_v14 = vmul.f32 %v491_v12, %v1762_v16  ;;  %v381_v15 = vstv %s1417_s10  ;;  %v263_v17 = vstv %s1402_s13  ;;  %s1442_s10 = sld [smem:[#allocation8 + $0x39]] }
  0xcb   :  { %v382_v18 = vmul.f32 %v381_v15, %v1780_v33  ;;  %v264_v19 = vmul.f32 %v263_v17, %v1806_v58  ;;  %v617_v20 = vstv %s1449_s14  ;;  %v389_v24 = vstv %s1418_s16  ;;  %s1459_s13 = sld [smem:[#allocation8 + $0x49]]  ;;  %s1443_s14 = sld [smem:[#allocation8 + $0x3a]] }
  0xcc   :  { %296 = vrot.lane.b32.xlu1 %v294_v22, %s1675_s6  ;;  %178 = vrot.lane.b32.xlu0 %v176_v21, %s1675_s6  ;;  %v499_v21 = vstv %s1433_s15  ;;  %v618_v22 = vmul.f32 %v617_v20, %v1756_v11  ;;  %v625_v28 = vstv %s1450_s18  ;;  %s134_s15 = sld [smem:[#allocation8]]  ;;  %s1460_s16 = sld [smem:[#allocation8 + $0x4a]] }
  0xcd   :  { %v500_v23 = vmul.f32 %v499_v21, %v1762_v16  ;;  %v519_v32 = vstv %s1436_s1  ;;  %v401_v34 = vstv %s1420_s3  ;;  %v409_v37 = vstv %s1421_s19  ;;  %s1463_s18 = sld [smem:[#allocation8 + $0x4d]]  ;;  %s1880_s3 = sld [smem:[#allocation8 + $0x4f]] }
  0xce   :  { %v645_v41 = vstv %s1453_s21  ;;  %v535_v45 = vstv %s1438_s23  ;;  %v425_v49 = vstv %s1423_s25  ;;  %v661_v53 = vstv %s1455_s27  ;;  %s1878_s1 = sld [smem:[#allocation8 + $0x5]]  ;;  %s1882_s19 = sld [smem:[#allocation8 + $0x4e]] }
  0xcf   :  { %v673_v57 = vstv %s1457_s2  ;;  %v555_v59 = vstv %s1441_s29  ;;  %v681_v62 = vstv %s1458_s9  ;;  %s1409_s21 = sld [smem:[#allocation8 + $0x19]]  ;;  %s1425_s23 = sld [smem:[#allocation8 + $0x28]] }
  0xd0   :  { %304 = vrot.lane.b32.xlu1 %v302_v25, %s1674_s30  ;;  %186 = vrot.lane.b32.xlu0 %v184_v26, %s1674_s30  ;;  %v271_v25 = vstv %s1403_s17  ;;  %v390_v26 = vmul.f32 %v389_v24, %v1780_v33  ;;  %s1444_s17 = sld [smem:[#allocation8 + $0x3b]]  ;;  %s1414_s25 = sld [smem:[#allocation8 + $0x1e]] }
  0xd1   :  { %v272_v27 = vmul.f32 %v271_v25, %v1806_v58  ;;  %v689_v2 = vstv %s1459_s13  ;;  %s1446_s27 = sld [smem:[#allocation8 + $0x3c]]  ;;  %s278_s2 = sld [smem:[#allocation11]] }
  0xd2   :  { %v135_v7 = vstv %s134_s15  ;;  %s1917_s29 = sld [smem:[#allocation8 + $0x32]]  ;;  %s1919_s9 = sld [smem:[#allocation8 + $0x41]] }
  0xd3   :  { %v136_v10 = vmul.f32 %v135_v7, %v1756_v11  ;;  %s1456_s13 = sld [smem:[#allocation8 + $0x46]]  ;;  %s1461_s15 = sld [smem:[#allocation8 + $0x4b]] }
  0xd4   :  { %312 = vrot.lane.b32.xlu1 %v310_v29, %s1677_s12  ;;  %194 = vrot.lane.b32.xlu0 %v192_v30, %s1677_s12  ;;  %v507_v29 = vstv %s1434_s0  ;;  %v626_v30 = vmul.f32 %v625_v28, %v1756_v11  ;;  %s1462_s0 = sld [smem:[#allocation8 + $0x4c]]  ;;  %v171_v25 = vstv %s1878_s1 }
  0xd5   :  { %v508_v31 = vmul.f32 %v507_v29, %v1762_v16  ;;  %v725_v28 = vstv %s1882_s19  ;;  %s1470_s1 = sld [smem:[#allocation9 + $0x4]]  ;;  %s1472_s19 = sld [smem:[#allocation9 + $0x6]] }
  0xd8   :  { %320 = vrot.lane.b32.xlu1 %v318_v35, %s1676_s11  ;;  %202 = vrot.lane.b32.xlu0 %v200_v36, %s1676_s11  ;;  %v520_v35 = vmul.f32 %v519_v32, %v1780_v33  ;;  %v402_v36 = vmul.f32 %v401_v34, %v1806_v58 }
  0xdc   :  { %332 = vrot.lane.b32.xlu1 %v330_v39, %s1675_s6  ;;  %214 = vrot.lane.b32.xlu0 %v212_v38, %s1675_s6  ;;  %v637_v38 = vstv %s1452_s20  ;;  %v410_v39 = vmul.f32 %v409_v37, %v1806_v58  ;;  %s1891_s20 = sld [smem:[#allocation8 + $0x14]] }
  0xdd   :  { %v638_v40 = vmul.f32 %v637_v38, %v1762_v16 }
  0xe0   :  { %222 = vrot.lane.b32.xlu1 %v220_v42, %s1674_s30  ;;  %450 = vrot.lane.b32.xlu0 %v448_v43, %s1675_s6  ;;  %v527_v42 = vstv %s1437_s22  ;;  %v646_v43 = vmul.f32 %v645_v41, %v1762_v16  ;;  %s1394_s22 = sld [smem:[#allocation8 + $0xa]] }
  0xe1   :  { %v528_v44 = vmul.f32 %v527_v42, %v1780_v33 }
  0xe2   :  { %v289_v37 = vstv %s1891_s20  ;;  %s1475_s20 = sld [smem:[#allocation9 + $0x9]] }
  0xe3   :  { %v290_v3 = vmul.f32 %v289_v37, %v1756_v11 }
  0xe4   :  { %458 = vrot.lane.b32.xlu1 %v456_v46, %s1674_s30  ;;  %340 = vrot.lane.b32.xlu0 %v338_v47, %s1674_s30  ;;  %v417_v46 = vstv %s1422_s24  ;;  %v536_v47 = vmul.f32 %v535_v45, %v1780_v33  ;;  %s1399_s24 = sld [smem:[#allocation8 + $0xf]] }
  0xe5   :  { %v418_v48 = vmul.f32 %v417_v46, %v1806_v58  ;;  %v325_v46 = vstv %s1409_s21  ;;  %s1474_s21 = sld [smem:[#allocation9 + $0x8]] }
  0xe8   :  { %348 = vrot.lane.b32.xlu1 %v346_v50, %s1677_s12  ;;  %230 = vrot.lane.b32.xlu0 %v228_v51, %s1677_s12  ;;  %v653_v50 = vstv %s1454_s26  ;;  %v426_v51 = vmul.f32 %v425_v49, %v1806_v58  ;;  %s1430_s26 = sld [smem:[#allocation8 + $0x2d]] }
  0xe9   :  { %v654_v52 = vmul.f32 %v653_v50, %v1762_v16 }
  0xec   :  { %238 = vrot.lane.b32.xlu1 %v236_v54, %s1676_s11  ;;  %466 = vrot.lane.b32.xlu0 %v464_v55, %s1677_s12  ;;  %v543_v54 = vstv %s1439_s28  ;;  %v662_v55 = vmul.f32 %v661_v53, %v1762_v16  ;;  %s1419_s28 = sld [smem:[#allocation8 + $0x23]] }
  0xed   :  { %v544_v56 = vmul.f32 %v543_v54, %v1780_v33  ;;  %v326_v54 = vmul.f32 %v325_v46, %v1762_v16 }
  0xf0   :  { %474 = vrot.lane.b32.xlu1 %v472_v60, %s1676_s11  ;;  %356 = vrot.lane.b32.xlu0 %v354_v61, %s1676_s11  ;;  %v674_v60 = vmul.f32 %v673_v57, %v1780_v33  ;;  %v556_v61 = vmul.f32 %v555_v59, %v1806_v58 }
  0xf4   :  { %368 = vrot.lane.b32.xlu1 %v366_v0, %s1675_s6  ;;  %250 = vrot.lane.b32.xlu0 %v248_v63, %s1675_s6  ;;  %v563_v63 = vstv %s1442_s10  ;;  %v682_v0 = vmul.f32 %v681_v62, %v1780_v33  ;;  %s1424_s10 = sld [smem:[#allocation11 + $0x1]] }
  0xf5   :  { %v564_v1 = vmul.f32 %v563_v63, %v1806_v58 }
  0xf8   :  { %604 = vrot.lane.b32.xlu1 %v602_v4, %s1675_s6  ;;  %486 = vrot.lane.b32.xlu0 %v484_v5, %s1675_s6  ;;  %v571_v4 = vstv %s1443_s14  ;;  %v690_v5 = vmul.f32 %v689_v2, %v1780_v33  ;;  %s1440_s14 = sld [smem:[#allocation8 + $0x37]] }
  0xf9   :  { %v572_v6 = vmul.f32 %v571_v4, %v1806_v58 }
  0xfc   :  { %376 = vrot.lane.b32.xlu1 %v374_v8, %s1674_s30  ;;  %258 = vrot.lane.b32.xlu0 %v256_v9, %s1674_s30  ;;  %v697_v8 = vstv %s1460_s16  ;;  %v579_v9 = vstv %s1444_s17  ;;  %s1445_s16 = sld [smem:[#allocation11 + $0x2]]  ;;  %s1466_s17 = sld [smem:[#allocation11 + $0x3]] }
  0xfd   :  { %v580_v15 = vmul.f32 %v579_v9, %v1806_v58 }
 0x100   :  { %612 = vrot.lane.b32.xlu1 %v610_v13, %s1674_s30  ;;  %494 = vrot.lane.b32.xlu0 %v492_v14, %s1674_s30  ;;  %v698_v14 = vmul.f32 %v697_v8, %v1780_v33  ;;  %v243_v8 = vstv %s1399_s24  ;;  %s1480_s24 = sld [smem:[#allocation9 + $0xe]] }
 0x104   :  { %384 = vrot.lane.b32.xlu1 %v382_v18, %s1677_s12  ;;  %266 = vrot.lane.b32.xlu0 %v264_v19, %s1677_s12  ;;  %v717_v18 = vstv %s1463_s18  ;;  %v709_v19 = vstv %s1462_s0  ;;  %s1468_s18 = sld [smem:[#allocation9 + $0x2]]  ;;  %s1467_s0 = sld [smem:[#allocation9 + $0x1]] }
 0x105   :  { %v710_v24 = vmul.f32 %v709_v19, %v1806_v58  ;;  %v244_v19 = vmul.f32 %v243_v8, %v1806_v58 }
 0x108   :  { %620 = vrot.lane.b32.xlu1 %v618_v22, %s1677_s12  ;;  %502 = vrot.lane.b32.xlu0 %v500_v23, %s1677_s12  ;;  %v718_v23 = vmul.f32 %v717_v18, %v1806_v58 }
 0x10c   :  { %392 = vrot.lane.b32.xlu1 %v390_v26, %s1676_s11  ;;  %274 = vrot.lane.b32.xlu0 %v272_v27, %s1676_s11  ;;  %v733_v27 = vstv %s1880_s3  ;;  %s1469_s3 = sld [smem:[#allocation9 + $0x3]] }
 0x10d   :  { %v734_v34 = vmul.f32 %v733_v27, %v1806_v58 }
 0x110   :  { %628 = vrot.lane.b32.xlu1 %v626_v30, %s1676_s11  ;;  %510 = vrot.lane.b32.xlu0 %v508_v31, %s1676_s11  ;;  %v172_v30 = vmul.f32 %v171_v25, %v1762_v16 }
 0x114   :  { %522 = vrot.lane.b32.xlu1 %v520_v35, %s1675_s6  ;;  %404 = vrot.lane.b32.xlu0 %v402_v36, %s1675_s6  ;;  %v726_v35 = vmul.f32 %v725_v28, %v1806_v58 }
 0x118   :  { %412 = vrot.lane.b32.xlu1 %v410_v39, %s1674_s30  ;;  %640 = vrot.lane.b32.xlu0 %v638_v40, %s1675_s6 }
 0x11c   :  { %648 = vrot.lane.b32.xlu1 %v646_v43, %s1674_s30  ;;  %530 = vrot.lane.b32.xlu0 %v528_v44, %s1674_s30 }
 0x120   :  { %538 = vrot.lane.b32.xlu1 %v536_v47, %s1677_s12  ;;  %420 = vrot.lane.b32.xlu0 %v418_v48, %s1677_s12  ;;  %v207_v47 = vstv %s1394_s22  ;;  %s1478_s22 = sld [smem:[#allocation9 + $0xc]] }
 0x124   :  { %428 = vrot.lane.b32.xlu1 %v426_v51, %s1676_s11  ;;  %656 = vrot.lane.b32.xlu0 %v654_v52, %s1677_s12 }
 0x128   :  { %664 = vrot.lane.b32.xlu1 %v662_v55, %s1676_s11  ;;  %546 = vrot.lane.b32.xlu0 %v544_v56, %s1676_s11  ;;  %v208_v55 = vmul.f32 %v207_v47, %v1780_v33 }
 0x12c   :  { %676 = vrot.lane.b32.xlu1 %v674_v60, %s1675_s6  ;;  %558 = vrot.lane.b32.xlu0 %v556_v61, %s1675_s6 }
 0x130   :  { %684 = vrot.lane.b32.xlu1 %v682_v0, %s1674_s30  ;;  %566 = vrot.lane.b32.xlu0 %v564_v1, %s1674_s30  ;;  %v443_v1 = vstv %s1425_s23  ;;  %s1477_s23 = sld [smem:[#allocation9 + $0xb]] }
 0x131   :  { %v444_v7 = vmul.f32 %v443_v1, %v1756_v11 }
 0x134   :  { %692 = vrot.lane.b32.xlu1 %v690_v5, %s1677_s12  ;;  %574 = vrot.lane.b32.xlu0 %v572_v6, %s1677_s12 }
 0x136   :  { %v151_v12 = vpop.permute.xlu1 %150  ;;  %v143_v13 = vpop.permute.xlu0 %142 }
 0x137   :  { %v145_v17 = vadd.f32 %v143_v13, %v136_v10 }
 0x138   :  { %700 = vrot.lane.b32.xlu1 %v698_v14, %s1676_s11  ;;  %582 = vrot.lane.b32.xlu0 %v580_v15, %s1676_s11 }
 0x139   :  { %v153_v20 = vadd.f32 %v151_v12, %v145_v17 }
 0x13a   :  { %v167_v21 = vpop.permute.xlu1 %166  ;;  %v159_v22 = vpop.permute.xlu0 %158 }
 0x13b   :  { %v161_v26 = vadd.f32 %v159_v22, %v153_v20  ;;  %v361_v20 = vstv %s1414_s25  ;;  %s1479_s25 = sld [smem:[#allocation9 + $0xd]] }
 0x13c   :  { %720 = vrot.lane.b32.xlu1 %v718_v23, %s1674_s30  ;;  %712 = vrot.lane.b32.xlu0 %v710_v24, %s1675_s6 }
 0x13d   :  { %v169_v29 = vadd.f32 %v167_v21, %v161_v26  ;;  %v479_v21 = vstv %s1430_s26  ;;  %s1487_s26 = sld [smem:[#allocation9 + $0x15]] }
 0x13e   :  { %v297_v31 = vpop.permute.xlu1 %296  ;;  %v179_v32 = vpop.permute.xlu0 %178 }
 0x13f   :  { %v173_v36 = vadd.f32 %v172_v30, %v169_v29  ;;  %v299_v41 = vadd.f32 %v297_v31, %v290_v3  ;;  %v362_v29 = vmul.f32 %v361_v20, %v1780_v33  ;;  %v480_v30 = vmul.f32 %v479_v21, %v1762_v16 }
 0x140   :  { %736 = vrot.lane.b32.xlu1 %v734_v34, %s1676_s11  ;;  %728 = vrot.lane.b32.xlu0 %v726_v35, %s1677_s12 }
 0x141   :  { %v181_v40 = vadd.f32 %v179_v32, %v173_v36 }
 0x142   :  { %v305_v38 = vpop.permute.xlu1 %304  ;;  %v187_v39 = vpop.permute.xlu0 %186 }
 0x143   :  { %v307_v44 = vadd.f32 %v305_v38, %v299_v41  ;;  %v189_v45 = vadd.f32 %v187_v39, %v181_v40 }
 0x146   :  { %v313_v42 = vpop.permute.xlu1 %312  ;;  %v195_v43 = vpop.permute.xlu0 %194 }
 0x147   :  { %v315_v48 = vadd.f32 %v313_v42, %v307_v44  ;;  %v197_v49 = vadd.f32 %v195_v43, %v189_v45  ;;  %v597_v43 = vstv %s1446_s27  ;;  %s1482_s27 = sld [smem:[#allocation9 + $0x10]] }
 0x14a   :  { %v321_v50 = vpop.permute.xlu1 %320  ;;  %v203_v51 = vpop.permute.xlu0 %202 }
 0x14b   :  { %v323_v52 = vadd.f32 %v321_v50, %v315_v48  ;;  %v205_v53 = vadd.f32 %v203_v51, %v197_v49  ;;  %v598_v48 = vmul.f32 %v597_v43, %v1756_v11  ;;  %v397_v51 = vstv %s1419_s28  ;;  %s1529_s28 = sld [smem:[#allocation9 + $0x3d]] }
 0x14d   :  { %v327_v56 = vadd.f32 %v326_v54, %v323_v52  ;;  %v209_v57 = vadd.f32 %v208_v55, %v205_v53 }
 0x14e   :  { %v333_v59 = vpop.permute.xlu1 %332  ;;  %v215_v60 = vpop.permute.xlu0 %214 }
 0x14f   :  { %v217_v2 = vadd.f32 %v215_v60, %v209_v57  ;;  %v335_v9 = vadd.f32 %v333_v59, %v327_v56  ;;  %v279_v57 = vstv %s278_s2  ;;  %v515_v60 = vstv %s1917_s29  ;;  %s1508_s2 = sld [smem:[#allocation9 + $0x29]]  ;;  %s1509_s29 = sld [smem:[#allocation9 + $0x2a]] }
 0x152   :  { %v223_v61 = vpop.permute.xlu1 %222  ;;  %v451_v62 = vpop.permute.xlu0 %450 }
 0x153   :  { %v225_v6 = vadd.f32 %v223_v61, %v217_v2  ;;  %v453_v10 = vadd.f32 %v451_v62, %v444_v7  ;;  %v398_v61 = vmul.f32 %v397_v51, %v1806_v58  ;;  %v633_v2 = vstv %s1919_s9  ;;  %s1488_s9 = sld [smem:[#allocation9 + $0x16]] }
 0x156   :  { %v459_v63 = vpop.permute.xlu1 %458  ;;  %v341_v0 = vpop.permute.xlu0 %340 }
 0x157   :  { %v461_v15 = vadd.f32 %v459_v63, %v453_v10  ;;  %v343_v17 = vadd.f32 %v341_v0, %v335_v9  ;;  %v516_v9 = vmul.f32 %v515_v60, %v1780_v33  ;;  %v705_v60 = vstv %s1461_s15  ;;  %s1510_s15 = sld [smem:[#allocation9 + $0x2b]] }
 0x15a   :  { %v349_v4 = vpop.permute.xlu1 %348  ;;  %v231_v5 = vpop.permute.xlu0 %230 }
 0x15b   :  { %v233_v12 = vadd.f32 %v231_v5, %v225_v6  ;;  %v351_v22 = vadd.f32 %v349_v4, %v343_v17 }
 0x15e   :  { %v239_v13 = vpop.permute.xlu1 %238  ;;  %v467_v14 = vpop.permute.xlu0 %466 }
 0x15f   :  { %v241_v18 = vadd.f32 %v239_v13, %v233_v12  ;;  %v469_v23 = vadd.f32 %v467_v14, %v461_v15  ;;  %v634_v14 = vmul.f32 %v633_v2, %v1762_v16 }
 0x161   :  { %v245_v24 = vadd.f32 %v244_v19, %v241_v18 }
 0x162   :  { %v475_v25 = vpop.permute.xlu1 %474  ;;  %v357_v26 = vpop.permute.xlu0 %356 }
 0x163   :  { %v477_v27 = vadd.f32 %v475_v25, %v469_v23  ;;  %v359_v28 = vadd.f32 %v357_v26, %v351_v22 }
 0x165   :  { %v363_v31 = vadd.f32 %v362_v29, %v359_v28  ;;  %v481_v32 = vadd.f32 %v480_v30, %v477_v27  ;;  %v433_v30 = vstv %s1424_s10  ;;  %s1489_s10 = sld [smem:[#allocation9 + $0x17]] }
 0x166   :  { %v369_v34 = vpop.permute.xlu1 %368  ;;  %v251_v35 = vpop.permute.xlu0 %250 }
 0x167   :  { %v371_v44 = vadd.f32 %v369_v34, %v363_v31  ;;  %v253_v45 = vadd.f32 %v251_v35, %v245_v24 }
 0x16a   :  { %v605_v36 = vpop.permute.xlu1 %604  ;;  %v487_v37 = vpop.permute.xlu0 %486 }
 0x16b   :  { %v607_v52 = vadd.f32 %v605_v36, %v598_v48  ;;  %v489_v53 = vadd.f32 %v487_v37, %v481_v32  ;;  %v669_v37 = vstv %s1456_s13  ;;  %s1530_s13 = sld [smem:[#allocation9 + $0x3e]] }
 0x16c   :  { %v670_v43 = vmul.f32 %v669_v37, %v1780_v33  ;;  %v811_v37 = vstv %s1474_s21  ;;  %s1535_s21 = sld [smem:[#allocation9 + $0x43]] }
 0x16e   :  { %v377_v38 = vpop.permute.xlu1 %376  ;;  %v259_v39 = vpop.permute.xlu0 %258 }
 0x16f   :  { %v379_v49 = vadd.f32 %v377_v38, %v371_v44  ;;  %v261_v50 = vadd.f32 %v259_v39, %v253_v45  ;;  %v551_v38 = vstv %s1440_s14  ;;  %s1531_s14 = sld [smem:[#allocation9 + $0x3f]] }
 0x172   :  { %v613_v3 = vpop.permute.xlu1 %612  ;;  %v495_v40 = vpop.permute.xlu0 %494 }
 0x173   :  { %v615_v62 = vadd.f32 %v613_v3, %v607_v52  ;;  %v497_v63 = vadd.f32 %v495_v40, %v489_v53 }
 0x176   :  { %v385_v41 = vpop.permute.xlu1 %384  ;;  %v267_v42 = vpop.permute.xlu0 %266 }
 0x177   :  { %v387_v54 = vadd.f32 %v385_v41, %v379_v49  ;;  %v269_v55 = vadd.f32 %v267_v42, %v261_v50 }
 0x17a   :  { %v621_v46 = vpop.permute.xlu1 %620  ;;  %v503_v47 = vpop.permute.xlu0 %502 }
 0x17b   :  { %v623_v11 = vadd.f32 %v621_v46, %v615_v62  ;;  %v505_v4 = vadd.f32 %v503_v47, %v497_v63  ;;  %v552_v47 = vmul.f32 %v551_v38, %v1806_v58 }
 0x17e   :  { %v393_v56 = vpop.permute.xlu1 %392  ;;  %v275_v59 = vpop.permute.xlu0 %274 }
 0x17f   :  { %v395_v0 = vadd.f32 %v393_v56, %v387_v54  ;;  %v277_v1 = vadd.f32 %v275_v59, %v269_v55 }
 0x181   :  { %v280_v5 = vadd.f32 %v279_v57, %v277_v1  ;;  %v399_v6 = vadd.f32 %v398_v61, %v395_v0  ;;  %v587_v0 = vstv %s1445_s16  ;;  %s1511_s16 = sld [smem:[#allocation9 + $0x2c]] }
 0x182   :  { %v629_v7 = vpop.permute.xlu1 %628  ;;  %v511_v8 = vpop.permute.xlu0 %510 }
 0x183   :  { %v281_v10 = vmax.f32 %v280_v5, 0.0  ;;  %v631_v12 = vadd.f32 %v629_v7, %v623_v11  ;;  %v513_v13 = vadd.f32 %v511_v8, %v505_v4  ;;  %v706_v4 = vmul.f32 %v705_v60, %v1806_v58 }
 0x184   :  { %v919_v60 = vstv %s1488_s9  ;;  %s1498_s9 = sld [smem:[#allocation9 + $0x20]] }
 0x185   :  { %283 = vrot.lane.b32.xlu0 %v281_v10, %s1672_s4  ;;  %v517_v15 = vadd.f32 %v516_v9, %v513_v13  ;;  %v635_v17 = vadd.f32 %v634_v14, %v631_v12 }
 0x186   :  { %v523_v18 = vpop.permute.xlu1 %522  ;;  %v405_v19 = vpop.permute.xlu0 %404 }
 0x187   :  { %v407_v24 = vadd.f32 %v405_v19, %v399_v6  ;;  %v525_v28 = vadd.f32 %v523_v18, %v517_v15 }
 0x18a   :  { %v413_v20 = vpop.permute.xlu1 %412  ;;  %v641_v21 = vpop.permute.xlu0 %640 }
 0x18b   :  { %v415_v27 = vadd.f32 %v413_v20, %v407_v24  ;;  %v643_v29 = vadd.f32 %v641_v21, %v635_v17  ;;  %v741_v17 = vstv %s1466_s17  ;;  %v767_v21 = vstv %s1468_s18  ;;  %s1490_s17 = sld [smem:[#allocation9 + $0x18]]  ;;  %s1492_s18 = sld [smem:[#allocation9 + $0x1a]] }
 0x18e   :  { %v649_v22 = vpop.permute.xlu1 %648  ;;  %v531_v23 = vpop.permute.xlu0 %530 }
 0x18f   :  { %v651_v34 = vadd.f32 %v649_v22, %v643_v29  ;;  %v533_v35 = vadd.f32 %v531_v23, %v525_v28  ;;  %v759_v22 = vstv %s1467_s0  ;;  %s1532_s0 = sld [smem:[#allocation9 + $0x40]] }
 0x192   :  { %v539_v25 = vpop.permute.xlu1 %538  ;;  %v421_v26 = vpop.permute.xlu0 %420 }
 0x193   :  { %v423_v16 = vadd.f32 %v421_v26, %v415_v27  ;;  %v541_v39 = vadd.f32 %v539_v25, %v533_v35  ;;  %v783_v26 = vstv %s1470_s1  ;;  %v775_v27 = vstv %s1469_s3  ;;  %s1534_s1 = sld [smem:[#allocation9 + $0x42]]  ;;  %s1513_s3 = sld [smem:[#allocation9 + $0x2e]] }
 0x196   :  { %v429_v31 = vpop.permute.xlu1 %428  ;;  %v657_v32 = vpop.permute.xlu0 %656 }
 0x197   :  { %v431_v36 = vadd.f32 %v429_v31, %v423_v16  ;;  %v659_v40 = vadd.f32 %v657_v32, %v651_v34  ;;  %v795_v31 = vstv %s1472_s19  ;;  %s1493_s19 = sld [smem:[#allocation9 + $0x1b]] }
 0x199   :  { %v434_v3 = vadd.f32 %v433_v30, %v431_v36  ;;  %v819_v36 = vstv %s1475_s20  ;;  %s1494_s20 = sld [smem:[#allocation9 + $0x1c]] }
 0x19a   :  { %v665_v41 = vpop.permute.xlu1 %664  ;;  %v547_v42 = vpop.permute.xlu0 %546 }
 0x19b   :  { %v435_v44 = vmax.f32 %v434_v3, 0.0  ;;  %v667_v45 = vadd.f32 %v665_v41, %v659_v40  ;;  %v549_v46 = vadd.f32 %v547_v42, %v541_v39  ;;  %v839_v40 = vstv %s1478_s22  ;;  %s1536_s22 = sld [smem:[#allocation9 + $0x44]] }
 0x19c   :  { %v831_v41 = vstv %s1477_s23  ;;  %s1515_s23 = sld [smem:[#allocation9 + $0x30]] }
 0x19d   :  { %437 = vrot.lane.b32.xlu1 %v435_v44, %s1672_s4  ;;  %v671_v48 = vadd.f32 %v670_v43, %v667_v45  ;;  %v553_v49 = vadd.f32 %v552_v47, %v549_v46  ;;  %v855_v46 = vstv %s1480_s24  ;;  %v847_v47 = vstv %s1479_s25  ;;  %s1516_s24 = sld [smem:[#allocation9 + $0x31]]  ;;  %s1495_s25 = sld [smem:[#allocation9 + $0x1d]] }
 0x19e   :  { %v677_v50 = vpop.permute.xlu1 %676  ;;  %v559_v51 = vpop.permute.xlu0 %558 }
 0x19f   :  { %v679_v54 = vadd.f32 %v677_v50, %v671_v48  ;;  %v561_v55 = vadd.f32 %v559_v51, %v553_v49  ;;  %v911_v50 = vstv %s1487_s26  ;;  %v867_v51 = vstv %s1482_s27  ;;  %s1497_s26 = sld [smem:[#allocation9 + $0x1f]]  ;;  %s1537_s27 = sld [smem:[#allocation9 + $0x45]] }
 0x1a2   :  { %v685_v52 = vpop.permute.xlu1 %684  ;;  %v567_v53 = vpop.permute.xlu0 %566 }
 0x1a3   :  { %v687_v33 = vadd.f32 %v685_v52, %v679_v54  ;;  %v569_v59 = vadd.f32 %v567_v53, %v561_v55  ;;  %v1217_v54 = vstv %s1529_s28  ;;  %s1539_s28 = sld [smem:[#allocation9 + $0x47]] }
 0x1a6   :  { %v693_v56 = vpop.permute.xlu1 %692  ;;  %v575_v57 = vpop.permute.xlu0 %574 }
 0x1a7   :  { %v695_v61 = vadd.f32 %v693_v56, %v687_v33  ;;  %v577_v62 = vadd.f32 %v575_v57, %v569_v59  ;;  %v1064_v56 = vstv %s1508_s2  ;;  %v1072_v33 = vstv %s1509_s29  ;;  %s1518_s2 = sld [smem:[#allocation9 + $0x33]]  ;;  %s1519_s29 = sld [smem:[#allocation9 + $0x34]] }
 0x1aa   :  { %v701_v63 = vpop.permute.xlu1 %700  ;;  %v583_v1 = vpop.permute.xlu0 %582 }
 0x1ab   :  { %v703_v2 = vadd.f32 %v701_v63, %v695_v61  ;;  %v585_v11 = vadd.f32 %v583_v1, %v577_v62  ;;  %v927_v62 = vstv %s1489_s10  ;;  %s1499_s10 = sld [smem:[#allocation9 + $0x21]] }
 0x1ad   :  { %v588_v5 = vadd.f32 %v587_v0, %v585_v11  ;;  %v707_v6 = vadd.f32 %v706_v4, %v703_v2  ;;  %v1225_v0 = vstv %s1530_s13  ;;  %v1233_v2 = vstv %s1531_s14  ;;  %s1540_s13 = sld [smem:[#allocation9 + $0x48]] }
 0x1ae   :  { %v721_v7 = vpop.permute.xlu1 %720  ;;  %v713_v8 = vpop.permute.xlu0 %712  ;;  %v1080_v4 = vstv %s1510_s15  ;;  %s754_s14 = sld [smem:[#allocation9]]  ;;  %s1541_s15 = sld [smem:[#allocation9 + $0x49]] }
 0x1af   :  { %v589_v9 = vmax.f32 %v588_v5, 0.0  ;;  %v715_v10 = vadd.f32 %v713_v8, %v707_v6  ;;  %v1088_v6 = vstv %s1511_s16  ;;  %v935_v8 = vstv %s1490_s17  ;;  %s1520_s16 = sld [smem:[#allocation9 + $0x35]]  ;;  %s1521_s17 = sld [smem:[#allocation9 + $0x36]] }
 0x1b1   :  { %591 = vrot.lane.b32.xlu0 %v589_v9, %s1672_s4  ;;  %v723_v12 = vadd.f32 %v721_v7, %v715_v10  ;;  %v947_v10 = vstv %s1492_s18  ;;  %s2029_s18 = sld [smem:[#allocation9 + $0x22]] }
 0x1b2   :  { %v729_v13 = vpop.permute.xlu0 %728  ;;  %v737_v15 = vpop.permute.xlu1 %736 }
 0x1b3   :  { %v731_v14 = vadd.f32 %v729_v13, %v723_v12  ;;  %v1241_v13 = vstv %s1532_s0  ;;  %s2033_s0 = sld [smem:[#allocation9 + $0x5]] }
 0x1b5   :  { %v739_v18 = vadd.f32 %v737_v15, %v731_v14  ;;  %v1253_v15 = vstv %s1534_s1  ;;  %s2035_s1 = sld [smem:[#allocation9 + $0x24]] }
 0x1b7   :  { %v742_v19 = vadd.f32 %v741_v17, %v739_v18  ;;  %v1100_v18 = vstv %s1513_s3  ;;  %s2040_s3 = sld [smem:[#allocation9 + $0x4a]] }
 0x1b9   :  { %v743_v20 = vmax.f32 %v742_v19, 0.0 }
 0x1bb   :  { %745 = vrot.lane.b32.xlu1 %v743_v20, %s1672_s4  ;;  %s1473_s4 = sld [smem:[#allocation9 + $0x7]] }
 0x1c1   :  { %v803_v30 = vstv %s1473_s4  ;;  %s1514_s4 = sld [smem:[#allocation9 + $0x2f]] }
 0x1c7   :  { %v1108_v20 = vstv %s1514_s4  ;;  %s2044_s4 = sld [smem:[#allocation9 + $0x4c]] }
 0x1f7   :  { %v284_v58 = vpop.permute.xlu0 %283 }
 0x1f8   :  { %287 = vst.msk [vmem:[#allocation3] sm:$0x3] %vm286_vm4, %v284_v58 }
 0x1ff   :  { %v1935_v23 = vld [vmem:[#allocation3] sm:$0x3] }
 0x200   :  { %v768_v24 = vmul.f32 %v767_v21, %v1935_v23  ;;  %v760_v25 = vmul.f32 %v759_v22, %v1935_v23  ;;  %v784_v28 = vmul.f32 %v783_v26, %v1935_v23  ;;  %v776_v29 = vmul.f32 %v775_v27, %v1935_v23 }
 0x201   :  { %v912_v52 = vmul.f32 %v911_v50, %v1935_v23  ;;  %v1218_v57 = vmul.f32 %v1217_v54, %v1935_v23  ;;  %v1065_v59 = vmul.f32 %v1064_v56, %v1935_v23  ;;  %v1073_v61 = vmul.f32 %v1072_v33, %v1935_v23 }
 0x202   :  { %770 = vrot.lane.b32.xlu1 %v768_v24, %s1674_s30  ;;  %762 = vrot.lane.b32.xlu0 %v760_v25, %s1675_s6  ;;  %v920_v63 = vmul.f32 %v919_v60, %v1935_v23  ;;  %v928_v1 = vmul.f32 %v927_v62, %v1935_v23  ;;  %v1226_v11 = vmul.f32 %v1225_v0, %v1935_v23  ;;  %v955_v21 = vstv %s1493_s19  ;;  %s1523_s19 = sld [smem:[#allocation9 + $0x38]] }
 0x203   :  { %v1234_v5 = vmul.f32 %v1233_v2, %v1935_v23  ;;  %v1081_v7 = vmul.f32 %v1080_v4, %v1935_v23  ;;  %v1089_v9 = vmul.f32 %v1088_v6, %v1935_v23  ;;  %v936_v12 = vmul.f32 %v935_v8, %v1935_v23 }
 0x204   :  { %v1242_v17 = vmul.f32 %v1241_v13, %v1935_v23  ;;  %v963_v24 = vstv %s1494_s20  ;;  %v1261_v26 = vstv %s1535_s21  ;;  %v755_v54 = vstv %s754_s14  ;;  %s1503_s20 = sld [smem:[#allocation9 + $0x25]]  ;;  %s1483_s21 = sld [smem:[#allocation9 + $0x11]] }
 0x205   :  { %v1152_v33 = vstv %s1520_s16  ;;  %v1007_v2 = vstv %s2029_s18  ;;  %s1491_s14 = sld [smem:[#allocation9 + $0x19]]  ;;  %s1517_s16 = sld [smem:[#allocation9 + $0x32]] }
 0x206   :  { %786 = vrot.lane.b32.xlu1 %v784_v28, %s1676_s11  ;;  %778 = vrot.lane.b32.xlu0 %v776_v29, %s1677_s12  ;;  %v1269_v28 = vstv %s1536_s22  ;;  %s1545_s22 = sld [smem:[#allocation9 + $0x4d]]  ;;  %s1538_s18 = sld [smem:[#allocation9 + $0x46]] }
 0x20f   :  { %v438_v16 = vpop.permute.xlu1 %437 }
 0x210   :  { %441 = vst.msk [vmem:[#allocation3 + $0x2] sm:$0x3] %vm286_vm4, %v438_v16  ;;  %v1116_v16 = vstv %s1515_s23  ;;  %s1524_s23 = sld [smem:[#allocation9 + $0x39]] }
 0x217   :  { %v1946_v32 = vld [vmem:[#allocation3 + $0x2] sm:$0x3] }
 0x218   :  { %v804_v34 = vmul.f32 %v803_v30, %v1946_v32  ;;  %v796_v35 = vmul.f32 %v795_v31, %v1946_v32  ;;  %v820_v38 = vmul.f32 %v819_v36, %v1946_v32  ;;  %v812_v39 = vmul.f32 %v811_v37, %v1946_v32 }
 0x219   :  { %v948_v14 = vmul.f32 %v947_v10, %v1946_v32  ;;  %v1254_v19 = vmul.f32 %v1253_v15, %v1946_v32  ;;  %v1101_v58 = vmul.f32 %v1100_v18, %v1946_v32  ;;  %v1109_v22 = vmul.f32 %v1108_v20, %v1946_v32 }
 0x21a   :  { %806 = vrot.lane.b32.xlu1 %v804_v34, %s1674_s30  ;;  %798 = vrot.lane.b32.xlu0 %v796_v35, %s1675_s6  ;;  %v956_v25 = vmul.f32 %v955_v21, %v1946_v32  ;;  %v964_v27 = vmul.f32 %v963_v24, %v1946_v32  ;;  %v1262_v29 = vmul.f32 %v1261_v26, %v1946_v32  ;;  %v1124_v31 = vstv %s1516_s24  ;;  %s1504_s24 = sld [smem:[#allocation9 + $0x26]] }
 0x21b   :  { %v1270_v30 = vmul.f32 %v1269_v28, %v1946_v32  ;;  %v1117_v34 = vmul.f32 %v1116_v16, %v1946_v32  ;;  %v971_v35 = vstv %s1495_s25  ;;  %v1125_v36 = vmul.f32 %v1124_v31, %v1946_v32  ;;  %s1484_s25 = sld [smem:[#allocation9 + $0x12]] }
 0x21c   :  { %v983_v37 = vstv %s1497_s26  ;;  %v1325_v15 = vstv %s2044_s4  ;;  %s1546_s26 = sld [smem:[#allocation9 + $0x4e]]  ;;  %s1506_s4 = sld [smem:[#allocation12 + $0x1]] }
 0x21e   :  { %822 = vrot.lane.b32.xlu1 %v820_v38, %s1676_s11  ;;  %814 = vrot.lane.b32.xlu0 %v812_v39, %s1677_s12  ;;  %v972_v38 = vmul.f32 %v971_v35, %v1946_v32  ;;  %v1277_v39 = vstv %s1537_s27  ;;  %s2070_s27 = sld [smem:[#allocation9 + $0x3a]] }
 0x223   :  { %v592_v3 = vpop.permute.xlu0 %591 }
 0x224   :  { %595 = vst.msk [vmem:[#allocation3 + $0x4] sm:$0x3] %vm286_vm4, %v592_v3 }
 0x22b   :  { %v1957_v42 = vld [vmem:[#allocation3 + $0x4] sm:$0x3] }
 0x22c   :  { %v840_v43 = vmul.f32 %v839_v40, %v1957_v42  ;;  %v832_v44 = vmul.f32 %v831_v41, %v1957_v42  ;;  %v856_v48 = vmul.f32 %v855_v46, %v1957_v42  ;;  %v848_v49 = vmul.f32 %v847_v47, %v1957_v42 }
 0x22d   :  { %v746_v45 = vpop.permute.xlu1 %745  ;;  %v984_v3 = vmul.f32 %v983_v37, %v1957_v42  ;;  %v1289_v40 = vstv %s1539_s28  ;;  %v1278_v41 = vmul.f32 %v1277_v39, %v1946_v32  ;;  %v991_v47 = vstv %s1498_s9  ;;  %s2074_s28 = sld [smem:[#allocation9 + $0xa]]  ;;  %s1526_s9 = sld [smem:[#allocation9 + $0x3b]] }
 0x22e   :  { %749 = vst.msk [vmem:[#allocation3 + $0x6] sm:$0x3] %vm286_vm4, %v746_v45  ;;  %842 = vrot.lane.b32.xlu1 %v840_v43, %s1674_s30  ;;  %834 = vrot.lane.b32.xlu0 %v832_v44, %s1675_s6  ;;  %v1136_v43 = vstv %s1518_s2  ;;  %v1290_v44 = vmul.f32 %v1289_v40, %v1957_v42  ;;  %v1144_v45 = vstv %s1519_s29  ;;  %v992_v50 = vmul.f32 %v991_v47, %v1957_v42  ;;  %s2080_s2 = sld [smem:[#allocation9 + $0x13]]  ;;  %s1547_s29 = sld [smem:[#allocation9 + $0x4f]] }
 0x22f   :  { %v1137_v46 = vmul.f32 %v1136_v43, %v1957_v42  ;;  %v1153_v0 = vmul.f32 %v1152_v33, %v1957_v42  ;;  %v1341_v37 = vstv %s1546_s26 }
 0x232   :  { %858 = vrot.lane.b32.xlu1 %v856_v48, %s1676_s11  ;;  %850 = vrot.lane.b32.xlu0 %v848_v49, %s1677_s12  ;;  %v1145_v48 = vmul.f32 %v1144_v45, %v1957_v42  ;;  %v999_v49 = vstv %s1499_s10  ;;  %s1486_s10 = sld [smem:[#allocation9 + $0x14]] }
 0x233   :  { %v827_v43 = vstv %s2074_s28 }
 0x235   :  { %v1969_v53 = vld [vmem:[#allocation3 + $0x6] sm:$0x3] }
 0x236   :  { %914 = vrot.lane.b32.xlu1 %v912_v52, %s1675_s6  ;;  %v868_v55 = vmul.f32 %v867_v51, %v1969_v53  ;;  %v1297_v51 = vstv %s1540_s13  ;;  %v1000_v52 = vmul.f32 %v999_v49, %v1957_v42  ;;  %v1326_v20 = vmul.f32 %v1325_v15, %v1969_v53  ;;  %s1512_s13 = sld [smem:[#allocation9 + $0x2d]] }
 0x237   :  { %v1298_v56 = vmul.f32 %v1297_v51, %v1957_v42  ;;  %v891_v49 = vstv %s2080_s2 }
 0x238   :  { %870 = vrot.lane.b32.xlu0 %v868_v55, %s1675_s6  ;;  %v1305_v55 = vstv %s1541_s15  ;;  %s1533_s15 = sld [smem:[#allocation9 + $0x41]] }
 0x23a   :  { %1220 = vrot.lane.b32.xlu1 %v1218_v57, %s1675_s6  ;;  %v756_v57 = vmul.f32 %v755_v54, %v1935_v23 }
 0x23c   :  { %1067 = vrot.lane.b32.xlu0 %v1065_v59, %s1675_s6 }
 0x23e   :  { %1075 = vrot.lane.b32.xlu1 %v1073_v61, %s1674_s30  ;;  %v1306_v61 = vmul.f32 %v1305_v55, %v1957_v42  ;;  %v892_v55 = vmul.f32 %v891_v49, %v1969_v53 }
 0x240   :  { %922 = vrot.lane.b32.xlu0 %v920_v63, %s1674_s30  ;;  %v1160_v63 = vstv %s1521_s17  ;;  %s1496_s17 = sld [smem:[#allocation9 + $0x1e]] }
 0x241   :  { %v1161_v4 = vmul.f32 %v1160_v63, %v1957_v42 }
 0x242   :  { %930 = vrot.lane.b32.xlu1 %v928_v1, %s1677_s12 }
 0x244   :  { %1228 = vrot.lane.b32.xlu0 %v1226_v11, %s1674_s30 }
 0x246   :  { %1236 = vrot.lane.b32.xlu1 %v1234_v5, %s1677_s12  ;;  %v791_v5 = vstv %s2033_s0  ;;  %s1522_s0 = sld [smem:[#allocation9 + $0x37]] }
 0x247   :  { %v792_v13 = vmul.f32 %v791_v5, %v1946_v32 }
 0x248   :  { %1083 = vrot.lane.b32.xlu0 %v1081_v7, %s1677_s12  ;;  %v1019_v7 = vstv %s2035_s1  ;;  %s1501_s1 = sld [smem:[#allocation9 + $0x23]] }
 0x24a   :  { %1091 = vrot.lane.b32.xlu1 %v1089_v9, %s1676_s11  ;;  %v1008_v9 = vmul.f32 %v1007_v2, %v1957_v42 }
 0x24c   :  { %938 = vrot.lane.b32.xlu0 %v936_v12, %s1676_s11  ;;  %v1313_v12 = vstv %s2040_s3  ;;  %s1543_s3 = sld [smem:[#allocation9 + $0x4b]] }
 0x24d   :  { %v1314_v18 = vmul.f32 %v1313_v12, %v1957_v42 }
 0x24e   :  { %950 = vrot.lane.b32.xlu1 %v948_v14, %s1675_s6  ;;  %v1020_v14 = vmul.f32 %v1019_v7, %v1969_v53 }
 0x250   :  { %1244 = vrot.lane.b32.xlu0 %v1242_v17, %s1676_s11 }
 0x252   :  { %1256 = vrot.lane.b32.xlu1 %v1254_v19, %s1675_s6  ;;  %v1172_v19 = vstv %s1523_s19  ;;  %s898_s19 = sld [smem:[#allocation12]] }
 0x253   :  { %v1173_v21 = vmul.f32 %v1172_v19, %v1969_v53 }
 0x254   :  { %1103 = vrot.lane.b32.xlu0 %v1101_v58, %s1675_s6  ;;  %v1027_v58 = vstv %s1503_s20  ;;  %s2119_s20 = sld [smem:[#allocation12 + $0x3]] }
 0x255   :  { %v1028_v24 = vmul.f32 %v1027_v58, %v1969_v53 }
 0x256   :  { %1111 = vrot.lane.b32.xlu1 %v1109_v22, %s1674_s30  ;;  %v875_v22 = vstv %s1483_s21  ;;  %s2121_s21 = sld [smem:[#allocation12 + $0x2]] }
 0x257   :  { %v876_v26 = vmul.f32 %v875_v22, %v1969_v53 }
 0x258   :  { %958 = vrot.lane.b32.xlu0 %v956_v25, %s1674_s30  ;;  %v1333_v25 = vstv %s1545_s22  ;;  %s1678_s22 = smov [#allocation14]  }
 0x259   :  { %v1334_v28 = vmul.f32 %v1333_v25, %v1969_v53 }
 0x25a   :  { %966 = vrot.lane.b32.xlu1 %v964_v27, %s1677_s12  ;;  %v1180_v27 = vstv %s1524_s23  ;;  %s1370_s23 = sshll.u32 %s1678_s22, 4  ;;  %s1371_s23 = int_to_ptr.vmem [resolvable:$true] %s1370_s23 }
 0x25b   :  { %v1181_v16 = vmul.f32 %v1180_v27, %v1969_v53  ;;  %p1638_p1 = scmp.lt.s32.totalorder %s1371_s23, %s1371_s23 }
 0x25c   :  { %1264 = vrot.lane.b32.xlu0 %v1262_v29, %s1674_s30  ;;  %v1035_v29 = vstv %s1504_s24  ;;  %s1633_s24 = scalar_lea.vmem %s1371_s23, 128 }
 0x25d   :  { %v1036_v35 = vmul.f32 %v1035_v29, %v1969_v53  ;;  %v1096_v29 = vstv %s1512_s13  ;;  %p1634_p0 = scmp.ne.s32.totalorder %s1371_s23, %s1633_s24  ;;  %p1639_p2 = scmp.lt.s32.totalorder %s1633_s24, %s1633_s24 }
 0x25e   :  { %1272 = vrot.lane.b32.xlu1 %v1270_v30, %s1677_s12  ;;  %v883_v30 = vstv %s1484_s25 }
 0x25f   :  { %p1640_p3 = por %p1639_p2, %p1638_p1 }
 0x260   :  { %1119 = vrot.lane.b32.xlu0 %v1117_v34, %s1677_s12 }
 0x261   :  { %p1641_p4 = pnand %p1640_p3, %p1634_p0 }
 0x262   :  { %1127 = vrot.lane.b32.xlu1 %v1125_v36, %s1676_s11 }
 0x264   :  { %974 = vrot.lane.b32.xlu0 %v972_v38, %s1676_s11  ;;  %v884_v38 = vmul.f32 %v883_v30, %v1969_v53 }
 0x266   :  { %986 = vrot.lane.b32.xlu1 %v984_v3, %s1675_s6  ;;  %v1188_v3 = vstv %s2070_s27 }
 0x267   :  { %v1189_v47 = vmul.f32 %v1188_v3, %v1969_v53 }
 0x268   :  { %1280 = vrot.lane.b32.xlu0 %v1278_v41, %s1676_s11  ;;  %v1342_v41 = vmul.f32 %v1341_v37, %v1969_v53 }
 0x26a   :  { %1292 = vrot.lane.b32.xlu1 %v1290_v44, %s1675_s6 }
 0x26c   :  { %1139 = vrot.lane.b32.xlu0 %v1137_v46, %s1675_s6 }
 0x26e   :  { %1147 = vrot.lane.b32.xlu1 %v1145_v48, %s1674_s30 }
 0x270   :  { %994 = vrot.lane.b32.xlu0 %v992_v50, %s1674_s30  ;;  %v828_v50 = vmul.f32 %v827_v43, %v1957_v42 }
 0x272   :  { %1002 = vrot.lane.b32.xlu1 %v1000_v52, %s1677_s12  ;;  %v1349_v52 = vstv %s1547_s29 }
 0x274   :  { %v771_v59 = vpop.permute.xlu1 %770  ;;  %1300 = vrot.lane.b32.xlu0 %v1298_v56, %s1674_s30  ;;  %v763_v60 = vpop.permute.xlu0 %762  ;;  %v1196_v56 = vstv %s1526_s9 }
 0x275   :  { %v765_v62 = vadd.f32 %v763_v60, %v756_v57  ;;  %v1350_v57 = vmul.f32 %v1349_v52, %v1969_v53  ;;  %v1197_v33 = vmul.f32 %v1196_v56, %v1969_v53 }
 0x276   :  { %1308 = vrot.lane.b32.xlu1 %v1306_v61, %s1677_s12 }
 0x277   :  { %v773_v1 = vadd.f32 %v771_v59, %v765_v62 }
 0x278   :  { %1155 = vrot.lane.b32.xlu0 %v1153_v0, %s1677_s12  ;;  %v779_v11 = vpop.permute.xlu0 %778  ;;  %v787_v8 = vpop.permute.xlu1 %786 }
 0x279   :  { %v781_v6 = vadd.f32 %v779_v11, %v773_v1 }
 0x27a   :  { %1163 = vrot.lane.b32.xlu1 %v1161_v4, %s1676_s11 }
 0x27b   :  { %v789_v10 = vadd.f32 %v787_v8, %v781_v6 }
 0x27c   :  { %1010 = vrot.lane.b32.xlu0 %v1008_v9, %s1676_s11 }
 0x27d   :  { %v793_v17 = vadd.f32 %v792_v13, %v789_v10 }
 0x27e   :  { %1022 = vrot.lane.b32.xlu1 %v1020_v14, %s1675_s6  ;;  %v907_v14 = vstv %s1486_s10 }
 0x27f   :  { %v908_v19 = vmul.f32 %v907_v14, %v1935_v23  ;;  %v1285_v14 = vstv %s1538_s18 }
 0x280   :  { %1316 = vrot.lane.b32.xlu0 %v1314_v18, %s1676_s11 }
 0x282   :  { %1328 = vrot.lane.b32.xlu1 %v1326_v20, %s1675_s6 }
 0x284   :  { %1175 = vrot.lane.b32.xlu0 %v1173_v21, %s1675_s6  ;;  %s2076_s6 = sld [smem:[#allocation9 + $0x27]] }
 0x286   :  { %1030 = vrot.lane.b32.xlu1 %v1028_v24, %s1674_s30 }
 0x288   :  { %878 = vrot.lane.b32.xlu0 %v876_v26, %s1674_s30 }
 0x28a   :  { %1336 = vrot.lane.b32.xlu1 %v1334_v28, %s1674_s30  ;;  %v1043_v45 = vstv %s2076_s6 }
 0x28b   :  { %v1044_v51 = vmul.f32 %v1043_v45, %v1969_v53 }
 0x28c   :  { %v807_v31 = vpop.permute.xlu1 %806  ;;  %1183 = vrot.lane.b32.xlu0 %v1181_v16, %s1674_s30  ;;  %v799_v34 = vpop.permute.xlu0 %798  ;;  %s1481_s30 = sld [smem:[#allocation9 + $0xf]] }
 0x28d   :  { %v801_v36 = vadd.f32 %v799_v34, %v793_v17  ;;  %v943_v34 = vstv %s1491_s14 }
 0x28e   :  { %1038 = vrot.lane.b32.xlu1 %v1036_v35, %s1677_s12 }
 0x28f   :  { %v809_v39 = vadd.f32 %v807_v31, %v801_v36 }
 0x290   :  { %886 = vrot.lane.b32.xlu0 %v884_v38, %s1677_s12  ;;  %v815_v40 = vpop.permute.xlu0 %814  ;;  %v823_v46 = vpop.permute.xlu1 %822  ;;  %v1097_v38 = vmul.f32 %v1096_v29, %v1946_v32 }
 0x291   :  { %v817_v44 = vadd.f32 %v815_v40, %v809_v39  ;;  %v944_v40 = vmul.f32 %v943_v34, %v1946_v32 }
 0x292   :  { %1344 = vrot.lane.b32.xlu1 %v1342_v41, %s1677_s12  ;;  %v863_v1 = vstv %s1481_s30 }
 0x293   :  { %v825_v48 = vadd.f32 %v823_v46, %v817_v44  ;;  %v864_v4 = vmul.f32 %v863_v1, %v1969_v53 }
 0x294   :  { %1191 = vrot.lane.b32.xlu0 %v1189_v47, %s1677_s12  ;;  %s1507_s12 = sld [smem:[#allocation9 + $0x28]] }
 0x295   :  { %v829_v54 = vadd.f32 %v828_v50, %v825_v48 }
 0x296   :  { %1046 = vrot.lane.b32.xlu1 %v1044_v51, %s1676_s11 }
 0x298   :  { %894 = vrot.lane.b32.xlu0 %v892_v55, %s1676_s11 }
 0x29a   :  { %1352 = vrot.lane.b32.xlu1 %v1350_v57, %s1676_s11  ;;  %v1060_v12 = vstv %s1507_s12 }
 0x29b   :  { %v1061_v17 = vmul.f32 %v1060_v12, %v1935_v23 }
 0x29c   :  { %1199 = vrot.lane.b32.xlu0 %v1197_v33, %s1676_s11  ;;  %s1528_s11 = sld [smem:[#allocation9 + $0x3c]] }
 0x2a0   :  { %v843_v59 = vpop.permute.xlu1 %842  ;;  %v835_v60 = vpop.permute.xlu0 %834 }
 0x2a1   :  { %v837_v61 = vadd.f32 %v835_v60, %v829_v54 }
 0x2a2   :  { %v1213_v58 = vstv %s1528_s11 }
 0x2a3   :  { %v845_v62 = vadd.f32 %v843_v59, %v837_v61  ;;  %v1214_v25 = vmul.f32 %v1213_v58, %v1935_v23  ;;  %v1249_v23 = vstv %s1533_s15 }
 0x2a4   :  { %v859_v63 = vpop.permute.xlu1 %858  ;;  %v851_v0 = vpop.permute.xlu0 %850  ;;  %v1250_v48 = vmul.f32 %v1249_v23, %v1946_v32 }
 0x2a5   :  { %v853_v2 = vadd.f32 %v851_v0, %v845_v62 }
 0x2a7   :  { %v861_v11 = vadd.f32 %v859_v63, %v853_v2  ;;  %v1132_v63 = vstv %s1517_s16  ;;  %v979_v2 = vstv %s1496_s17 }
 0x2a8   :  { %v915_v5 = vpop.permute.xlu1 %914 }
 0x2a9   :  { %v865_v6 = vadd.f32 %v864_v4, %v861_v11  ;;  %v917_v22 = vadd.f32 %v915_v5, %v908_v19 }
 0x2aa   :  { %v871_v7 = vpop.permute.xlu0 %870 }
 0x2ab   :  { %v2105_v8 = vadd.f32 %v871_v7, %v865_v6  ;;  %v1133_v6 = vmul.f32 %v1132_v63, %v1957_v42 }
 0x2ac   :  { %v1221_v9 = vpop.permute.xlu1 %1220 }
 0x2ad   :  { %v1223_v16 = vadd.f32 %v1221_v9, %v1214_v25 }
 0x2ae   :  { %v1068_v10 = vpop.permute.xlu0 %1067 }
 0x2af   :  { %v1070_v20 = vadd.f32 %v1068_v10, %v1061_v17  ;;  %v980_v10 = vmul.f32 %v979_v2, %v1957_v42 }
 0x2b0   :  { %v1076_v13 = vpop.permute.xlu1 %1075 }
 0x2b1   :  { %v1078_v26 = vadd.f32 %v1076_v13, %v1070_v20  ;;  %v1286_v20 = vmul.f32 %v1285_v14, %v1957_v42 }
 0x2b2   :  { %v923_v15 = vpop.permute.xlu0 %922 }
 0x2b3   :  { %v925_v27 = vadd.f32 %v923_v15, %v917_v22 }
 0x2b4   :  { %v931_v18 = vpop.permute.xlu1 %930 }
 0x2b5   :  { %v933_v35 = vadd.f32 %v931_v18, %v925_v27 }
 0x2b6   :  { %v1229_v21 = vpop.permute.xlu0 %1228 }
 0x2b7   :  { %v1231_v36 = vadd.f32 %v1229_v21, %v1223_v16 }
 0x2b8   :  { %v1237_v24 = vpop.permute.xlu1 %1236 }
 0x2b9   :  { %v1239_v44 = vadd.f32 %v1237_v24, %v1231_v36 }
 0x2ba   :  { %v1084_v28 = vpop.permute.xlu0 %1083 }
 0x2bb   :  { %v1086_v30 = vadd.f32 %v1084_v28, %v1078_v26 }
 0x2bc   :  { %v1092_v31 = vpop.permute.xlu1 %1091 }
 0x2bd   :  { %v1094_v37 = vadd.f32 %v1092_v31, %v1086_v30 }
 0x2be   :  { %v939_v39 = vpop.permute.xlu0 %938 }
 0x2bf   :  { %v941_v3 = vadd.f32 %v939_v39, %v933_v35  ;;  %v1098_v41 = vadd.f32 %v1097_v38, %v1094_v37  ;;  %v1168_v35 = vstv %s1522_s0  ;;  %v1015_v38 = vstv %s1501_s1 }
 0x2c0   :  { %v951_v43 = vpop.permute.xlu1 %950 }
 0x2c1   :  { %v945_v45 = vadd.f32 %v944_v40, %v941_v3 }
 0x2c2   :  { %v1245_v46 = vpop.permute.xlu0 %1244 }
 0x2c3   :  { %v1247_v47 = vadd.f32 %v1245_v46, %v1239_v44  ;;  %v953_v33 = vadd.f32 %v951_v43, %v945_v45  ;;  %v1016_v44 = vmul.f32 %v1015_v38, %v1969_v53 }
 0x2c4   :  { %v1257_v49 = vpop.permute.xlu1 %1256 }
 0x2c5   :  { %v1251_v50 = vadd.f32 %v1250_v48, %v1247_v47  ;;  %v1321_v47 = vstv %s1543_s3 }
 0x2c6   :  { %v1104_v51 = vpop.permute.xlu0 %1103 }
 0x2c7   :  { %v1106_v56 = vadd.f32 %v1104_v51, %v1098_v41  ;;  %v1259_v0 = vadd.f32 %v1257_v49, %v1251_v50  ;;  %v1169_v41 = vmul.f32 %v1168_v35, %v1969_v53 }
 0x2c8   :  { %v1112_v52 = vpop.permute.xlu1 %1111 }
 0x2c9   :  { %v1114_v60 = vadd.f32 %v1112_v52, %v1106_v56  ;;  %v1322_v52 = vmul.f32 %v1321_v47, %v1969_v53 }
 0x2ca   :  { %v959_v54 = vpop.permute.xlu0 %958 }
 0x2cb   :  { %v961_v61 = vadd.f32 %v959_v54, %v953_v33 }
 0x2cc   :  { %v967_v55 = vpop.permute.xlu1 %966 }
 0x2cd   :  { %v969_v11 = vadd.f32 %v967_v55, %v961_v61 }
 0x2ce   :  { %v1265_v57 = vpop.permute.xlu0 %1264 }
 0x2cf   :  { %v1267_v4 = vadd.f32 %v1265_v57, %v1259_v0 }
 0x2d0   :  { %v1273_v59 = vpop.permute.xlu1 %1272 }
 0x2d1   :  { %v1275_v15 = vadd.f32 %v1273_v59, %v1267_v4  ;;  %v1051_v4 = vstv %s1506_s4 }
 0x2d2   :  { %v1120_v62 = vpop.permute.xlu0 %1119 }
 0x2d3   :  { %v1122_v1 = vadd.f32 %v1120_v62, %v1114_v60 }
 0x2d4   :  { %v1128_v32 = vpop.permute.xlu1 %1127 }
 0x2d5   :  { %v1130_v5 = vadd.f32 %v1128_v32, %v1122_v1 }
 0x2d6   :  { %v975_v7 = vpop.permute.xlu0 %974 }
 0x2d7   :  { %v977_v9 = vadd.f32 %v975_v7, %v969_v11  ;;  %v1134_v12 = vadd.f32 %v1133_v6, %v1130_v5 }
 0x2d8   :  { %v987_v13 = vpop.permute.xlu1 %986 }
 0x2d9   :  { %v981_v17 = vadd.f32 %v980_v10, %v977_v9 }
 0x2da   :  { %v1281_v18 = vpop.permute.xlu0 %1280 }
 0x2db   :  { %v1283_v19 = vadd.f32 %v1281_v18, %v1275_v15  ;;  %v989_v29 = vadd.f32 %v987_v13, %v981_v17  ;;  %v899_v13 = vstv %s898_s19 }
 0x2dc   :  { %v1293_v58 = vpop.permute.xlu1 %1292 }
 0x2dd   :  { %v1287_v21 = vadd.f32 %v1286_v20, %v1283_v19  ;;  %v901_v20 = vld [vmem:[#allocation4] sm:$0x3] }
 0x2de   :  { %v1140_v22 = vpop.permute.xlu0 %1139 }
 0x2df   :  { %v1142_v27 = vadd.f32 %v1140_v22, %v1134_v12  ;;  %v1295_v36 = vadd.f32 %v1293_v58, %v1287_v21  ;;  %v1054_v12 = vld [vmem:[#allocation4 + $0x2] sm:$0x3]  ;;  %v1357_v58 = vstv %s2119_s20 }
 0x2e0   :  { %v1148_v24 = vpop.permute.xlu1 %1147 }
 0x2e1   :  { %v1150_v30 = vadd.f32 %v1148_v24, %v1142_v27  ;;  %v1204_v27 = vstv %s2121_s21 }
 0x2e2   :  { %v995_v25 = vpop.permute.xlu0 %994 }
 0x2e3   :  { %v997_v31 = vadd.f32 %v995_v25, %v989_v29 }
 0x2e4   :  { %v1003_v26 = vpop.permute.xlu1 %1002 }
 0x2e5   :  { %v1005_v39 = vadd.f32 %v1003_v26, %v997_v31  ;;  %v1360_v26 = vld [vmem:[#allocation4 + $0x6] sm:$0x3] }
 0x2e6   :  { %v1301_v28 = vpop.permute.xlu0 %1300 }
 0x2e7   :  { %v1303_v3 = vadd.f32 %v1301_v28, %v1295_v36 }
 0x2e8   :  { %v1309_v16 = vpop.permute.xlu1 %1308 }
 0x2e9   :  { %v1311_v48 = vadd.f32 %v1309_v16, %v1303_v3 }
 0x2ea   :  { %v1156_v34 = vpop.permute.xlu0 %1155 }
 0x2eb   :  { %v1158_v37 = vadd.f32 %v1156_v34, %v1150_v30  ;;  %v1207_v34 = vld [vmem:[#allocation4 + $0x4] sm:$0x3] }
 0x2ec   :  { %v1164_v42 = vpop.permute.xlu1 %1163 }
 0x2ed   :  { %v1166_v40 = vadd.f32 %v1164_v42, %v1158_v37 }
 0x2ee   :  { %v1011_v43 = vpop.permute.xlu0 %1010 }
 0x2ef   :  { %v1013_v23 = vadd.f32 %v1011_v43, %v1005_v39  ;;  %v1170_v45 = vadd.f32 %v1169_v41, %v1166_v40 }
 0x2f0   :  { %v1023_v46 = vpop.permute.xlu1 %1022 }
 0x2f1   :  { %v1017_v49 = vadd.f32 %v1016_v44, %v1013_v23 }
 0x2f2   :  { %v1317_v50 = vpop.permute.xlu0 %1316 }
 0x2f3   :  { %v1319_v51 = vadd.f32 %v1317_v50, %v1311_v48  ;;  %v1025_v63 = vadd.f32 %v1023_v46, %v1017_v49 }
 0x2f4   :  { %v1329_v54 = vpop.permute.xlu1 %1328 }
 0x2f5   :  { %v1323_v55 = vadd.f32 %v1322_v52, %v1319_v51 }
 0x2f6   :  { %v1176_v56 = vpop.permute.xlu0 %1175 }
 0x2f7   :  { %v1331_v53 = vadd.f32 %v1329_v54, %v1323_v55  ;;  %v1178_v6 = vadd.f32 %v1176_v56, %v1170_v45 }
 0x2f8   :  { %v1031_v57 = vpop.permute.xlu1 %1030 }
 0x2f9   :  { %v1033_v1 = vadd.f32 %v1031_v57, %v1025_v63 }
 0x2fa   :  { %v879_v33 = vpop.permute.xlu0 %878 }
 0x2fb   :  { %v881_v2 = vadd.f32 %v879_v33, %v2105_v8 }
 0x2fc   :  { %v1337_v59 = vpop.permute.xlu1 %1336 }
 0x2fd   :  { %v1339_v7 = vadd.f32 %v1337_v59, %v1331_v53 }
 0x2fe   :  { %v1184_v60 = vpop.permute.xlu0 %1183 }
 0x2ff   :  { %v1186_v15 = vadd.f32 %v1184_v60, %v1178_v6 }
 0x300   :  { %v1039_v61 = vpop.permute.xlu1 %1038 }
 0x301   :  { %v1041_v11 = vadd.f32 %v1039_v61, %v1033_v1 }
 0x302   :  { %v887_v62 = vpop.permute.xlu0 %886 }
 0x303   :  { %v889_v9 = vadd.f32 %v887_v62, %v881_v2 }
 0x304   :  { %v1345_v0 = vpop.permute.xlu1 %1344 }
 0x305   :  { %v1347_v17 = vadd.f32 %v1345_v0, %v1339_v7 }
 0x306   :  { %v1192_v32 = vpop.permute.xlu0 %1191 }
 0x307   :  { %v1194_v8 = vadd.f32 %v1192_v32, %v1186_v15 }
 0x308   :  { %v1047_v5 = vpop.permute.xlu1 %1046 }
 0x309   :  { %v1049_v10 = vadd.f32 %v1047_v5, %v1041_v11 }
 0x30a   :  { %v895_v14 = vpop.permute.xlu0 %894 }
 0x30b   :  { %v1052_v18 = vadd.f32 %v1051_v4, %v1049_v10  ;;  %v897_v19 = vadd.f32 %v895_v14, %v889_v9 }
 0x30c   :  { %v1353_v21 = vpop.permute.xlu1 %1352 }
 0x30d   :  { %v1055_v22 = vadd.f32 %v1054_v12, %v1052_v18  ;;  %v900_v24 = vadd.f32 %v899_v13, %v897_v19  ;;  %v1355_v25 = vadd.f32 %v1353_v21, %v1347_v17 }
 0x30e   :  { %v1200_v28 = vpop.permute.xlu0 %1199 }
 0x30f   :  { %v1056_v29 = vmax.f32 %v1055_v22, 0.0  ;;  %v902_v16 = vadd.f32 %v901_v20, %v900_v24  ;;  %v1358_v30 = vadd.f32 %v1357_v58, %v1355_v25  ;;  %v1202_v31 = vadd.f32 %v1200_v28, %v1194_v8 }
 0x311   :  { %v903_v35 = vmax.f32 %v902_v16, 0.0  ;;  %v1361_v36 = vadd.f32 %v1360_v26, %v1358_v30  ;;  %v1205_v37 = vadd.f32 %v1204_v27, %v1202_v31  ;;  %1058 = vst.msk [vmem:[#allocation14 + $0x2] sm:$0x3] %vm904_vm5, %v1056_v29 }
 0x313   :  { %v1362_v42 = vmax.f32 %v1361_v36, 0.0  ;;  %v1208_v38 = vadd.f32 %v1207_v34, %v1205_v37  ;;  %905 = vst.msk [vmem:[#allocation14] sm:$0x3] %vm904_vm5, %v903_v35 }
 0x315   :  { %v1209_v39 = vmax.f32 %v1208_v38, 0.0  ;;  %1364 = vst.msk [vmem:[#allocation14 + $0x6] sm:$0x3] %vm904_vm5, %v1362_v42 }
 0x317   :  { %1211 = vst.msk [vmem:[#allocation14 + $0x4] sm:$0x3] %vm904_vm5, %v1209_v39 }
 0x318   :  { %1644 = shalt.err (!%p1641_p4)
}
 0x319   :  { %s1645_s27 = scalar_lea.hbm %s2150_s5, 128 }
 0x31a   :  { %p1646_p5 = scmp.ne.s32.totalorder %s2150_s5, %s1645_s27  ;;  %p1649_p6 = scmp.lt.u32.totalorder %s1645_s27, %s2150_s5 }
 0x31c   :  { %p1651_p7 = pnand %p1649_p6, %p1646_p5 }
 0x31e   :  { %1654 = shalt.err (!%p1651_p7)
}
 0x31f   :  { %1376 = dma.vmem_to_hbm [thread:$0]  %s1371_s23, 128, %s2150_s5, [#allocation6], %s1667_s7, %s1667_s7, %s1668_s8  }
 0x320   :  { %1663 = dma.done.wait [#allocation6], 128  }
 0x321   :  { %1664 = vsyncadd [#allocation6], 4294967168 }
 0x322   :  { %1380 = vsyncpa [#allocation5], 1 }
 0x323   :  { %1381 = vsyncpa [#allocation6], 1 }
 0x324   :  { %1382 = vsyncpa [#allocation7], 1 }
 0x325   :  { %1383 = vsyncpa [#allocation10], 1 }
 0x326   :  { %1384 = vsyncpa [#allocation13], 1 }

</bundles_post_ra>
